<compile_context>
chip_gen: v5e
topology: v5e:2x2
jax: 0.10.0
libtpu: 0.0.40
codegen_flags: <defaults>
</compile_context>

<pallas_src>
import jax
import jax.numpy as jnp
from jax.experimental import pallas as pl
from jax.experimental.pallas import tpu as pltpu


def _deep_classifier_kernel(nstd_ref,
                            x_ref, eps_ref,
                            w_in_ref, b_in_ref,
                            w_mid_ref, b_mid_ref,
                            w_out_ref, b_out_ref,
                            out_ref):
    """Fused deepClassifier.forward: reparam + 3 block-diagonal Linear+sigmoid."""
    n_std = nstd_ref[0, 0]                                         # SMEM scalar
    x = x_ref[...] + n_std * eps_ref[...]                          # (TB, D)

    sig = jax.nn.sigmoid

    # layer 1: both input branches in one (D, 2D) matmul
    h = sig(jnp.dot(x, w_in_ref[...],
                    preferred_element_type=jnp.float32) + b_in_ref[...])   # (TB, 2D)
    # layer 2: block-diagonal (2D, 2D) keeps branches independent
    h = sig(jnp.dot(h, w_mid_ref[...],
                    preferred_element_type=jnp.float32) + b_mid_ref[...])  # (TB, 2D)
    # output head: block-diagonal (2D, 2) directly produces concat([y1, y2], 1)
    out_ref[...] = sig(jnp.dot(h, w_out_ref[...],
                               preferred_element_type=jnp.float32)
                       + b_out_ref[...])                                   # (TB, 2)


def fuse_params(params):
    """Host-side fusion of the six per-branch Linear layers into three."""
    D = params["win1"].shape[0]
    zDD = jnp.zeros((D, D), jnp.float32)
    zD1 = jnp.zeros((D, 1), jnp.float32)
    return {
        "w_in": jnp.concatenate([params["win1"], params["win2"]], axis=1),   # (D, 2D)
        "b_in": jnp.concatenate([params["bin1"], params["bin2"]], axis=1),   # (1, 2D)
        "w_mid": jnp.block([[params["w11"], zDD],
                            [zDD, params["w12"]]]),                          # (2D, 2D)
        "b_mid": jnp.concatenate([params["b11"], params["b12"]], axis=1),    # (1, 2D)
        "w_out": jnp.block([[params["wo1"], zD1],
                            [zD1, params["wo2"]]]),                          # (2D, 2)
        "b_out": jnp.concatenate([params["bo1"], params["bo2"]], axis=1),    # (1, 2)
    }


def deep_classifier_forward(x, eps, fused, n_std, *, batch_tile=128):
    """Pallas forward. x, eps: (B, D) float32; fused: output of fuse_params."""
    B, D = x.shape
    tb = min(batch_tile, B)
    assert B % tb == 0 and tb % 8 == 0, "batch must tile into multiples of 8"
    grid = (B // tb,)

    nstd_arr = jnp.full((1, 1), n_std, dtype=jnp.float32)

    in_specs = [
        pl.BlockSpec(memory_space=pltpu.MemorySpace.SMEM),        # n_std scalar
        pl.BlockSpec((tb, D), lambda i: (i, 0)),                  # x
        pl.BlockSpec((tb, D), lambda i: (i, 0)),                  # eps
        pl.BlockSpec((D, 2 * D), lambda i: (0, 0)),               # W_in  (resident)
        pl.BlockSpec((1, 2 * D), lambda i: (0, 0)),               # b_in
        pl.BlockSpec((2 * D, 2 * D), lambda i: (0, 0)),           # W_mid (resident)
        pl.BlockSpec((1, 2 * D), lambda i: (0, 0)),               # b_mid
        pl.BlockSpec((2 * D, 2), lambda i: (0, 0)),               # W_out (resident)
        pl.BlockSpec((1, 2), lambda i: (0, 0)),                   # b_out
    ]
    out_specs = pl.BlockSpec((tb, 2), lambda i: (i, 0))

    return pl.pallas_call(
        _deep_classifier_kernel,
        out_shape=jax.ShapeDtypeStruct((B, 2), jnp.float32),
        grid=grid,
        in_specs=in_specs,
        out_specs=out_specs,
        compiler_params=pltpu.CompilerParams(
            dimension_semantics=("parallel",)),   # shards batch across TCs on v7x
    )(nstd_arr, x, eps,
      fused["w_in"], fused["b_in"],
      fused["w_mid"], fused["b_mid"],
      fused["w_out"], fused["b_out"])


def init_params(key, input_dim):
    """Deterministic init mimicking nn.Linear default (U[-1/sqrt(fan_in), +])."""
    def linear_init(k, fan_in, fan_out):
        kw, kb = jax.random.split(k)
        bound = 1.0 / jnp.sqrt(jnp.float32(fan_in))
        # stored pre-transposed: (in, out)
        w = jax.random.uniform(kw, (fan_in, fan_out), jnp.float32, -bound, bound)
        b = jax.random.uniform(kb, (1, fan_out), jnp.float32, -bound, bound)
        return w, b

    keys = jax.random.split(key, 6)
    p = {}
    p["win1"], p["bin1"] = linear_init(keys[0], input_dim, input_dim)   # fcin1
    p["win2"], p["bin2"] = linear_init(keys[1], input_dim, input_dim)   # fcin2
    p["w11"], p["b11"] = linear_init(keys[2], input_dim, input_dim)     # fc11
    p["w12"], p["b12"] = linear_init(keys[3], input_dim, input_dim)     # fc12
    p["wo1"], p["bo1"] = linear_init(keys[4], input_dim, 1)             # fcout1
    p["wo2"], p["bo2"] = linear_init(keys[5], input_dim, 1)             # fcout2
    return p


def reference_forward(x, eps, params, n_std):
    """Pure-JAX reference (original per-branch formulation) for verification."""
    xn = x + n_std * eps
    sig = jax.nn.sigmoid
    x1 = sig(xn @ params["win1"] + params["bin1"])
    x2 = sig(xn @ params["win2"] + params["bin2"])
    x1 = sig(x1 @ params["w11"] + params["b11"])
    x2 = sig(x2 @ params["w12"] + params["b12"])
    y1 = sig(x1 @ params["wo1"] + params["bo1"])
    y2 = sig(x2 @ params["wo2"] + params["bo2"])
    return jnp.concatenate([y1, y2], axis=1)


if __name__ == "__main__":
    B = 256        # batch (amortizes per-call launch cost; 2 tiles of 128)
    D = 32         # input_dim
    N_STD = 0.1    # n_std hyperparameter

    key = jax.random.PRNGKey(0)
    k_x, k_eps, k_p = jax.random.split(key, 3)

    x = jax.random.normal(k_x, (B, D), dtype=jnp.float32)
    eps = jax.random.normal(k_eps, (B, D), dtype=jnp.float32)  # reparam noise
    params = init_params(k_p, D)
    fused = fuse_params(params)

    y = deep_classifier_forward(x, eps, fused, N_STD, batch_tile=128)
    y = jax.block_until_ready(y)

    y_ref = reference_forward(x, eps, params, N_STD)
    assert y.shape == (B, 2), y.shape
    assert jnp.allclose(y, y_ref, atol=1e-4, rtol=1e-4), "mismatch vs reference"

    print("KERNEL_OK")
</pallas_src>

<mosaic_0001>
module attributes {stable_mosaic.version = 11 : i64} {
  func.func @_deep_classifier_kernel(%arg0: i32, %arg1: memref<1x1xf32, #tpu.memory_space<smem>>, %arg2: memref<128x32xf32, #tpu.memory_space<vmem>>, %arg3: memref<128x32xf32, #tpu.memory_space<vmem>>, %arg4: memref<32x64xf32, #tpu.memory_space<vmem>>, %arg5: memref<1x64xf32, #tpu.memory_space<vmem>>, %arg6: memref<64x64xf32, #tpu.memory_space<vmem>>, %arg7: memref<1x64xf32, #tpu.memory_space<vmem>>, %arg8: memref<64x2xf32, #tpu.memory_space<vmem>>, %arg9: memref<1x2xf32, #tpu.memory_space<vmem>>, %arg10: memref<128x2xf32, #tpu.memory_space<vmem>>) attributes {dimension_semantics = [#tpu.dimension_semantics<parallel>], iteration_bounds = array<i64: 2>, scalar_prefetch = 0 : i64, scratch_operands = 0 : i64, tpu.core_type = #tpu.core_type<tc>, window_params = [{transform_indices = @transform_0, window_bounds = array<i64: 1, 1>}, {transform_indices = @transform_1, window_bounds = array<i64: 128, 32>}, {transform_indices = @transform_2, window_bounds = array<i64: 128, 32>}, {pipeline_mode = #tpu.pipeline_mode<synchronous>, transform_indices = @transform_3, window_bounds = array<i64: 32, 64>}, {pipeline_mode = #tpu.pipeline_mode<synchronous>, transform_indices = @transform_4, window_bounds = array<i64: 1, 64>}, {pipeline_mode = #tpu.pipeline_mode<synchronous>, transform_indices = @transform_5, window_bounds = array<i64: 64, 64>}, {pipeline_mode = #tpu.pipeline_mode<synchronous>, transform_indices = @transform_6, window_bounds = array<i64: 1, 64>}, {pipeline_mode = #tpu.pipeline_mode<synchronous>, transform_indices = @transform_7, window_bounds = array<i64: 64, 2>}, {pipeline_mode = #tpu.pipeline_mode<synchronous>, transform_indices = @transform_8, window_bounds = array<i64: 1, 2>}, {transform_indices = @transform_9, window_bounds = array<i64: 128, 2>}]} {
    %c0 = arith.constant 0 : index
    %c0_0 = arith.constant 0 : index
    %0 = memref.load %arg1[%c0, %c0_0] : memref<1x1xf32, #tpu.memory_space<smem>>
    %c0_1 = arith.constant 0 : index
    %c0_2 = arith.constant 0 : index
    %1 = vector.load %arg2[%c0_1, %c0_2] : memref<128x32xf32, #tpu.memory_space<vmem>>, vector<128x32xf32>
    %c0_3 = arith.constant 0 : index
    %c0_4 = arith.constant 0 : index
    %2 = vector.load %arg3[%c0_3, %c0_4] : memref<128x32xf32, #tpu.memory_space<vmem>>, vector<128x32xf32>
    %3 = vector.broadcast %0 : f32 to vector<128x32xf32>
    %4 = arith.mulf %3, %2 : vector<128x32xf32>
    %5 = arith.addf %1, %4 : vector<128x32xf32>
    %c0_5 = arith.constant 0 : index
    %c0_6 = arith.constant 0 : index
    %6 = vector.load %arg4[%c0_5, %c0_6] : memref<32x64xf32, #tpu.memory_space<vmem>>, vector<32x64xf32>
    %cst = arith.constant dense<0.000000e+00> : vector<128x64xf32>
    %7 = tpu.matmul %5, %6, %cst {dimension_numbers = #tpu.dot_dimension_numbers<[1], [0], [0], [1], [0, 0, 1, 1], [], []>} : vector<128x32xf32>, vector<32x64xf32>, vector<128x64xf32> -> vector<128x64xf32>
    %c0_7 = arith.constant 0 : index
    %c0_8 = arith.constant 0 : index
    %8 = vector.load %arg5[%c0_7, %c0_8] : memref<1x64xf32, #tpu.memory_space<vmem>>, vector<1x64xf32>
    %9 = vector.broadcast %8 : vector<1x64xf32> to vector<128x64xf32>
    %10 = arith.addf %7, %9 : vector<128x64xf32>
    %11 = arith.negf %10 : vector<128x64xf32>
    %12 = math.exp %11 : vector<128x64xf32>
    %cst_9 = arith.constant 1.000000e+00 : f32
    %13 = vector.broadcast %cst_9 : f32 to vector<128x64xf32>
    %14 = arith.addf %13, %12 : vector<128x64xf32>
    %15 = arith.divf %13, %14 : vector<128x64xf32>
    %c0_10 = arith.constant 0 : index
    %c0_11 = arith.constant 0 : index
    %16 = vector.load %arg6[%c0_10, %c0_11] : memref<64x64xf32, #tpu.memory_space<vmem>>, vector<64x64xf32>
    %cst_12 = arith.constant dense<0.000000e+00> : vector<128x64xf32>
    %17 = tpu.matmul %15, %16, %cst_12 {dimension_numbers = #tpu.dot_dimension_numbers<[1], [0], [0], [1], [0, 0, 1, 1], [], []>} : vector<128x64xf32>, vector<64x64xf32>, vector<128x64xf32> -> vector<128x64xf32>
    %c0_13 = arith.constant 0 : index
    %c0_14 = arith.constant 0 : index
    %18 = vector.load %arg7[%c0_13, %c0_14] : memref<1x64xf32, #tpu.memory_space<vmem>>, vector<1x64xf32>
    %19 = vector.broadcast %18 : vector<1x64xf32> to vector<128x64xf32>
    %20 = arith.addf %17, %19 : vector<128x64xf32>
    %21 = arith.negf %20 : vector<128x64xf32>
    %22 = math.exp %21 : vector<128x64xf32>
    %cst_15 = arith.constant 1.000000e+00 : f32
    %23 = vector.broadcast %cst_15 : f32 to vector<128x64xf32>
    %24 = arith.addf %23, %22 : vector<128x64xf32>
    %25 = arith.divf %23, %24 : vector<128x64xf32>
    %c0_16 = arith.constant 0 : index
    %c0_17 = arith.constant 0 : index
    %26 = vector.load %arg8[%c0_16, %c0_17] : memref<64x2xf32, #tpu.memory_space<vmem>>, vector<64x2xf32>
    %cst_18 = arith.constant dense<0.000000e+00> : vector<128x2xf32>
    %27 = tpu.matmul %25, %26, %cst_18 {dimension_numbers = #tpu.dot_dimension_numbers<[1], [0], [0], [1], [0, 0, 1, 1], [], []>} : vector<128x64xf32>, vector<64x2xf32>, vector<128x2xf32> -> vector<128x2xf32>
    %c0_19 = arith.constant 0 : index
    %c0_20 = arith.constant 0 : index
    %28 = vector.load %arg9[%c0_19, %c0_20] : memref<1x2xf32, #tpu.memory_space<vmem>>, vector<1x2xf32>
    %29 = vector.broadcast %28 : vector<1x2xf32> to vector<128x2xf32>
    %30 = arith.addf %27, %29 : vector<128x2xf32>
    %31 = arith.negf %30 : vector<128x2xf32>
    %32 = math.exp %31 : vector<128x2xf32>
    %cst_21 = arith.constant 1.000000e+00 : f32
    %33 = vector.broadcast %cst_21 : f32 to vector<128x2xf32>
    %34 = arith.addf %33, %32 : vector<128x2xf32>
    %35 = arith.divf %33, %34 : vector<128x2xf32>
    %c0_22 = arith.constant 0 : index
    %c0_23 = arith.constant 0 : index
    %36 = vector.load %arg10[%c0_22, %c0_23] : memref<128x2xf32, #tpu.memory_space<vmem>>, vector<128x2xf32>
    tpu.vector_store %arg10[%c0_22, %c0_23], %35 {strides = array<i32>} : memref<128x2xf32, #tpu.memory_space<vmem>>, vector<128x2xf32>,
    return
  }
  func.func @transform_0(%arg0: i32) -> (i32, i32) {
    %c0_i32 = arith.constant 0 : i32
    %c0_i32_0 = arith.constant 0 : i32
    %c0_i32_1 = arith.constant 0 : i32
    return %c0_i32, %c0_i32_0 : i32, i32
  }
  func.func @transform_1(%arg0: i32) -> (i32, i32) {
    %c0_i32 = arith.constant 0 : i32
    %c0_i32_0 = arith.constant 0 : i32
    return %arg0, %c0_i32 : i32, i32
  }
  func.func @transform_2(%arg0: i32) -> (i32, i32) {
    %c0_i32 = arith.constant 0 : i32
    %c0_i32_0 = arith.constant 0 : i32
    return %arg0, %c0_i32 : i32, i32
  }
  func.func @transform_3(%arg0: i32) -> (i32, i32) {
    %c0_i32 = arith.constant 0 : i32
    %c0_i32_0 = arith.constant 0 : i32
    %c0_i32_1 = arith.constant 0 : i32
    return %c0_i32, %c0_i32_0 : i32, i32
  }
  func.func @transform_4(%arg0: i32) -> (i32, i32) {
    %c0_i32 = arith.constant 0 : i32
    %c0_i32_0 = arith.constant 0 : i32
    %c0_i32_1 = arith.constant 0 : i32
    return %c0_i32, %c0_i32_0 : i32, i32
  }
  func.func @transform_5(%arg0: i32) -> (i32, i32) {
    %c0_i32 = arith.constant 0 : i32
    %c0_i32_0 = arith.constant 0 : i32
    %c0_i32_1 = arith.constant 0 : i32
    return %c0_i32, %c0_i32_0 : i32, i32
  }
  func.func @transform_6(%arg0: i32) -> (i32, i32) {
    %c0_i32 = arith.constant 0 : i32
    %c0_i32_0 = arith.constant 0 : i32
    %c0_i32_1 = arith.constant 0 : i32
    return %c0_i32, %c0_i32_0 : i32, i32
  }
  func.func @transform_7(%arg0: i32) -> (i32, i32) {
    %c0_i32 = arith.constant 0 : i32
    %c0_i32_0 = arith.constant 0 : i32
    %c0_i32_1 = arith.constant 0 : i32
    return %c0_i32, %c0_i32_0 : i32, i32
  }
  func.func @transform_8(%arg0: i32) -> (i32, i32) {
    %c0_i32 = arith.constant 0 : i32
    %c0_i32_0 = arith.constant 0 : i32
    %c0_i32_1 = arith.constant 0 : i32
    return %c0_i32, %c0_i32_0 : i32, i32
  }
  func.func @transform_9(%arg0: i32) -> (i32, i32) {
    %c0_i32 = arith.constant 0 : i32
    %c0_i32_0 = arith.constant 0 : i32
    return %arg0, %c0_i32 : i32, i32
  }
}

</mosaic_0001>

<bundles_post_ra>
// kernel: tpu_custom_call.1
= control target key start
LH: loop header
LB: loop body
LE: loop exit
PB: predicated region body
PF: predicated region fallthrough
CT: control target
= control target key end

     0   :  { %s2188_s11 = smov 0   ;;  %s2493_s0 = inlined_call_operand.<no memory space> [shape: f32[1,1], index: 0, kind: input, shape index: {}]   ;;  %s2494_s1 = inlined_call_operand.vmem [shape: f32[256,32], index: 1, kind: input, shape index: {}]   ;;  %s2495_s2 = inlined_call_operand.vmem [shape: f32[256,32], index: 2, kind: input, shape index: {}]   ;;  %s2496_s3 = inlined_call_operand.vmem [shape: f32[32,64], index: 3, kind: input, shape index: {}]   ;;  %s2497_s4 = inlined_call_operand.vmem [shape: f32[1,64], index: 4, kind: input, shape index: {}]   ;;  %s2498_s5 = inlined_call_operand.vmem [shape: f32[64,64], index: 5, kind: input, shape index: {}]   ;;  %s2499_s6 = inlined_call_operand.vmem [shape: f32[1,64], index: 6, kind: input, shape index: {}]   ;;  %s2500_s7 = inlined_call_operand.vmem [shape: f32[64,2], index: 7, kind: input, shape index: {}]   ;;  %s2501_s8 = inlined_call_operand.vmem [shape: f32[1,2], index: 8, kind: input, shape index: {}]   ;;  %s2502_s9 = inlined_call_operand.vmem [shape: f32[256,2], index: 9, kind: output, shape index: {}]  }
   0x1   :  { %14 = sst [smem:[#allocation2]] %s2493_s0 }
   0x2 LB: > { %s1795_s12 = sadd.s32 4294967295, %s2133_s11   ;;  %p1799_p0 = scmp.ge.s32.totalorder %s2133_s11, 1  ;;  %s2133_s11 = sphi %s2188_s11, %s20_s11  }
   0x3   : > { %p300_p1 = scmp.lt.s32.totalorder %s2133_s11, 3 }
   0x5   : > { %p301_p2 = pnand %p1799_p0, %p300_p1 }
   0x6   : > { %s1800_s16 = sshll.u32 (!%p301_p2), %s1795_s12, 4  ;;  %s359_s17 = sld [smem:[#allocation2]] (!%p301_p2) }
   0x7   : > { %304 = sbr.rel (%p301_p2) target bundleno = 622 (0x26e), region = 56  ;;  %p342_p3 = scmp.lt.s32.totalorder (!%p301_p2), %s1800_s16, 31 }
   0xc   : > { %v428_v0 = vld [vmem:[%s2496_s3 + $0x18] sm:$0xff]  ;;  %v427_v1 = vld [vmem:[%s2496_s3 + $0x10] sm:$0xff]  ;;  %v426_v2 = vld [vmem:[%s2496_s3 + $0x8] sm:$0xff]  ;;  %s2504_s16 = smov (!%p342_p3, %s1800_s16), 31  ;;  %v2222_v4 = vstv %s359_s17  ;;  %vm433_vm0 = vcmask 261120   ;;  %vm863_vm4 = vcmask 523264  }
   0xd   : > { %494 = vmatpush.msra.mxu0 %v428_v0  ;;  %1904 = vmatpush.msra.mxu3 %v428_v0  ;;  %v425_v3 = vld [vmem:[%s2496_s3] sm:$0xff]  ;;  %s2208_s22 = sshll.u32 %s2504_s16, 3 }
   0xe   : > { %s2214_s25 = scalar_lea.vmem %s2494_s1, %s2208_s22  ;;  %s2220_s28 = scalar_lea.vmem %s2495_s2, %s2208_s22 }
   0xf   : > { %495 = vmatpush.msra.mxu0 %v427_v1  ;;  %1905 = vmatpush.msra.mxu3 %v427_v1  ;;  %v360_v5 = vld [vmem:[%s2214_s25] sm:$0xff]  ;;  %v377_v8 = vld [vmem:[%s2220_s28 + $0x8] sm:$0xff]  ;;  %v378_v13 = vld [vmem:[%s2220_s28 + $0x10] sm:$0xff]  ;;  %s2444_s29 = scalar_lea.vmem %s2502_s9, %s2208_s22 }
  0x10   : > { %v376_v6 = vld [vmem:[%s2220_s28] sm:$0xff]  ;;  %v394_v10 = vmul.f32 %v2222_v4, %v377_v8  ;;  %v361_v11 = vld [vmem:[%s2214_s25 + $0x8] sm:$0xff]  ;;  %v395_v14 = vmul.f32 %v2222_v4, %v378_v13  ;;  %v362_v15 = vld [vmem:[%s2214_s25 + $0x10] sm:$0xff] }
  0x11   : > { %496 = vmatpush.msra.mxu0 %v426_v2  ;;  %1906 = vmatpush.msra.mxu3 %v426_v2  ;;  %v393_v7 = vmul.f32 %v2222_v4, %v376_v6  ;;  %v379_v17 = vld [vmem:[%s2220_s28 + $0x18] sm:$0xff]  ;;  %v380_v21 = vld [vmem:[%s2220_s28 + $0x20] sm:$0xff]  ;;  %v381_v25 = vld [vmem:[%s2220_s28 + $0x28] sm:$0xff] }
  0x12   : > { %v410_v12 = vadd.f32 %v394_v10, %v361_v11  ;;  %v411_v16 = vadd.f32 %v395_v14, %v362_v15  ;;  %v396_v18 = vmul.f32 %v2222_v4, %v379_v17  ;;  %v363_v19 = vld [vmem:[%s2214_s25 + $0x18] sm:$0xff]  ;;  %v397_v22 = vmul.f32 %v2222_v4, %v380_v21  ;;  %v364_v23 = vld [vmem:[%s2214_s25 + $0x20] sm:$0xff]  ;;  %v365_v27 = vld [vmem:[%s2214_s25 + $0x28] sm:$0xff] }
  0x13   : > { %497 = vmatpush.msra.mxu0 %v425_v3  ;;  %1907 = vmatpush.msra.mxu3 %v425_v3  ;;  %v409_v9 = vadd.f32 %v393_v7, %v360_v5  ;;  %v398_v26 = vmul.f32 %v2222_v4, %v381_v25  ;;  %v382_v29 = vld [vmem:[%s2220_s28 + $0x30] sm:$0xff]  ;;  %v383_v33 = vld [vmem:[%s2220_s28 + $0x38] sm:$0xff]  ;;  %v373_v35 = vld [vmem:[%s2214_s25 + $0x68] sm:$0xff] }
  0x14   : > { %v412_v20 = vadd.f32 %v396_v18, %v363_v19  ;;  %v413_v24 = vadd.f32 %v397_v22, %v364_v23  ;;  %v399_v30 = vmul.f32 %v2222_v4, %v382_v29  ;;  %v366_v31 = vld [vmem:[%s2214_s25 + $0x30] sm:$0xff]  ;;  %v400_v34 = vmul.f32 %v2222_v4, %v383_v33  ;;  %v389_v36 = vld [vmem:[%s2220_s28 + $0x68] sm:$0xff]  ;;  %v367_v37 = vld [vmem:[%s2214_s25 + $0x38] sm:$0xff] }
  0x15   : > { %1806 = vmatmul.msk.f32.vlgmr.msra.gmra.mxu0 %vm433_vm0, %v409_v9  ;;  %v414_v28 = vadd.f32 %v398_v26, %v365_v27  ;;  %v406_v38 = vmul.f32 %v2222_v4, %v389_v36  ;;  %v384_v41 = vld [vmem:[%s2220_s28 + $0x40] sm:$0xff]  ;;  %v374_v43 = vld [vmem:[%s2214_s25 + $0x70] sm:$0xff]  ;;  %v385_v49 = vld [vmem:[%s2220_s28 + $0x48] sm:$0xff] }
  0x16   : > { %v415_v32 = vadd.f32 %v399_v30, %v366_v31  ;;  %v416_v40 = vadd.f32 %v400_v34, %v367_v37  ;;  %v401_v42 = vmul.f32 %v2222_v4, %v384_v41  ;;  %v390_v44 = vld [vmem:[%s2220_s28 + $0x70] sm:$0xff]  ;;  %v368_v45 = vld [vmem:[%s2214_s25 + $0x40] sm:$0xff]  ;;  %v402_v50 = vmul.f32 %v2222_v4, %v385_v49  ;;  %v375_v51 = vld [vmem:[%s2214_s25 + $0x78] sm:$0xff] }
  0x17   : > { %v422_v39 = vadd.f32 %v406_v38, %v373_v35  ;;  %v407_v46 = vmul.f32 %v2222_v4, %v390_v44  ;;  %v391_v52 = vld [vmem:[%s2220_s28 + $0x78] sm:$0xff]  ;;  %v369_v53 = vld [vmem:[%s2214_s25 + $0x48] sm:$0xff]  ;;  %v386_v57 = vld [vmem:[%s2220_s28 + $0x50] sm:$0xff] }
  0x18   : > { %v417_v48 = vadd.f32 %v401_v42, %v368_v45  ;;  %v408_v54 = vmul.f32 %v2222_v4, %v391_v52  ;;  %v418_v56 = vadd.f32 %v402_v50, %v369_v53  ;;  %v403_v58 = vmul.f32 %v2222_v4, %v386_v57  ;;  %v370_v59 = vld [vmem:[%s2214_s25 + $0x50] sm:$0xff]  ;;  %v387_v61 = vld [vmem:[%s2220_s28 + $0x58] sm:$0xff]  ;;  %v388_v1 = vld [vmem:[%s2220_s28 + $0x60] sm:$0xff] }
  0x19   : > { %1819 = vmatmul.msk.f32.vlgmr.msra.gmra.mxu3 %vm433_vm0, %v422_v39  ;;  %v423_v47 = vadd.f32 %v407_v46, %v374_v43  ;;  %v404_v62 = vmul.f32 %v2222_v4, %v387_v61  ;;  %v371_v63 = vld [vmem:[%s2214_s25 + $0x58] sm:$0xff]  ;;  %v405_v2 = vmul.f32 %v2222_v4, %v388_v1  ;;  %v372_v3 = vld [vmem:[%s2214_s25 + $0x60] sm:$0xff]  ;;  %v857_v7 = vld [vmem:[%s2498_s5 + $0x30] sm:$0xff] }
  0x1a   : > { %v424_v55 = vadd.f32 %v408_v54, %v375_v51  ;;  %v419_v60 = vadd.f32 %v403_v58, %v370_v59  ;;  %v858_v6 = vld [vmem:[%s2498_s5 + $0x38] sm:$0xff]  ;;  %v856_v4 = vld [vmem:[%s2498_s5 + $0x28] sm:$0xff]  ;;  %v855_v8 = vld [vmem:[%s2498_s5 + $0x20] sm:$0xff] }
  0x1b   : > { %v420_v0 = vadd.f32 %v404_v62, %v371_v63  ;;  %v421_v5 = vadd.f32 %v405_v2, %v372_v3  ;;  %920 = vmatpush.msra.mxu1 %v858_v6  ;;  %1908 = vmatpush.msrb.mxu3 %v858_v6  ;;  %v854_v9 = vld [vmem:[%s2498_s5 + $0x18] sm:$0xff]  ;;  %v853_v10 = vld [vmem:[%s2498_s5 + $0x10] sm:$0xff]  ;;  %v852_v11 = vld [vmem:[%s2498_s5 + $0x8] sm:$0xff] }
  0x1c   : > { %v851_v13 = vld [vmem:[%s2498_s5] sm:$0xff] }
  0x1d   : > { %1807 = vmatmul.msk.f32.gmra.mxu0 %vm433_vm0, %v410_v12  ;;  %921 = vmatpush.msra.mxu1 %v857_v7  ;;  %v2312_v12 = vld [vmem:[%s2497_s4] ss:$0 sm:$0xff] }
  0x1e   : > { %1909 = vmatpush.msrb.mxu3 %v857_v7 }
  0x1f   : > { %922 = vmatpush.msra.mxu1 %v856_v4 }
  0x20   : > { %1910 = vmatpush.msrb.mxu3 %v856_v4 }
  0x21   : > { %1820 = vmatmul.msk.f32.gmra.mxu3 %vm433_vm0, %v423_v47  ;;  %923 = vmatpush.msra.mxu1 %v855_v8 }
  0x22   : > { %1911 = vmatpush.msrb.mxu3 %v855_v8 }
  0x23   : > { %924 = vmatpush.msra.mxu1 %v854_v9 }
  0x24   : > { %1912 = vmatpush.msrb.mxu3 %v854_v9 }
  0x25   : > { %1808 = vmatmul.msk.f32.gmra.mxu0 %vm433_vm0, %v411_v16  ;;  %925 = vmatpush.msra.mxu1 %v853_v10 }
  0x26   : > { %1913 = vmatpush.msrb.mxu3 %v853_v10 }
  0x27   : > { %926 = vmatpush.msra.mxu1 %v852_v11 }
  0x28   : > { %1914 = vmatpush.msrb.mxu3 %v852_v11 }
  0x29   : > { %1821 = vmatmul.msk.f32.gmra.mxu3 %vm433_vm0, %v424_v55  ;;  %927 = vmatpush.msra.mxu1 %v851_v13 }
  0x2a   : > { %1915 = vmatpush.msrb.mxu3 %v851_v13 }
  0x2d   : > { %1809 = vmatmul.msk.f32.gmra.mxu0 %vm433_vm0, %v412_v20 }
  0x35   : > { %1810 = vmatmul.msk.f32.gmra.mxu0 %vm433_vm0, %v413_v24 }
  0x3d   : > { %1811 = vmatmul.msk.f32.gmra.mxu0 %vm433_vm0, %v414_v28 }
  0x45   : > { %1812 = vmatmul.msk.f32.gmra.mxu0 %vm433_vm0, %v415_v32 }
  0x4d   : > { %1813 = vmatmul.msk.f32.gmra.mxu0 %vm433_vm0, %v416_v40 }
  0x55   : > { %1814 = vmatmul.msk.f32.gmra.mxu0 %vm433_vm0, %v417_v48 }
  0x5d   : > { %1815 = vmatmul.msk.f32.gmra.mxu0 %vm433_vm0, %v418_v56 }
  0x65   : > { %1816 = vmatmul.msk.f32.gmra.mxu0 %vm433_vm0, %v419_v60 }
  0x6d   : > { %1817 = vmatmul.msk.f32.gmra.mxu0 %vm433_vm0, %v420_v0 }
  0x75   : > { %1818 = vmatmul.msk.f32.gmra.mxu0 %vm433_vm0, %v421_v5 }
  0x92   : > { %v499_v14 = vpop.f32.mrf.mxu0 }
  0x93   : > { %v500_v15 = vadd.f32 %v2312_v12, %v499_v14 }
  0x95   : > { %v1822_v16 = vmul.f32 -1.442695, %v500_v15 }
  0x97   : > { %1935 = vpow2.f32 %v1822_v16 }
  0x9a   : > { %v502_v17 = vpop.f32.mrf.mxu0 }
  0x9b   : > { %v503_v18 = vadd.f32 %v2312_v12, %v502_v17 }
  0x9d   : > { %v1936_v19 = vpop.eup %1935  ;;  %v1823_v20 = vmul.f32 -1.442695, %v503_v18 }
  0x9e   : > { %v595_v21 = vadd.f32 1.0, %v1936_v19 }
  0x9f   : > { %1937 = vpow2.f32 %v1823_v20 }
  0xa0   : > { %1939 = vrcp.f32 %v595_v21  ;;  %v622_v31 = vand.u32 2147483648, %v595_v21  ;;  %v620_v34 = vand.u32 2147483647, %v595_v21  ;;  %vm616_vm2 = vweird.f32 %v595_v21 }
  0xa2   : > { %v505_v22 = vpop.f32.mrf.mxu0  ;;  %v623_v40 = vor.u32 1.1754944e-38, %v622_v31  ;;  %vm621_vm5 = vcmp.eq.f32.partialorder %v620_v34, 8.507059e+37 }
  0xa3   : > { %v506_v23 = vadd.f32 %v2312_v12, %v505_v22 }
  0xa5   : > { %v1938_v24 = vpop.eup %1937  ;;  %v1824_v25 = vmul.f32 -1.442695, %v506_v23 }
  0xa6   : > { %v1940_v26 = vpop.eup %1939  ;;  %v596_v27 = vadd.f32 1.0, %v1938_v24 }
  0xa7   : > { %1941 = vpow2.f32 %v1824_v25  ;;  %v612_v28 = vmul.f32 %v1940_v26, %v595_v21  ;;  %vm617_vm1 = vweird.f32 %v1940_v26 }
  0xa8   : > { %1943 = vrcp.f32 %v596_v27  ;;  %vm618_vm3 = vmor %vm616_vm2, %vm617_vm1  ;;  %v637_v46 = vand.u32 2147483648, %v596_v27  ;;  %v635_v49 = vand.u32 2147483647, %v596_v27  ;;  %vm631_vm7 = vweird.f32 %v596_v27 }
  0xa9   : > { %v613_v29 = vsub.f32 1.0, %v612_v28 }
  0xaa   : > { %v508_v30 = vpop.f32.mrf.mxu0  ;;  %v638_v55 = vor.u32 1.1754944e-38, %v637_v46  ;;  %vm636_vm9 = vcmp.eq.f32.partialorder %v635_v49, 8.507059e+37 }
  0xab   : > { %v509_v32 = vadd.f32 %v2312_v12, %v508_v30  ;;  %v614_v33 = vmul.f32 %v1940_v26, %v613_v29 }
  0xad   : > { %v1942_v35 = vpop.eup %1941  ;;  %v1825_v36 = vmul.f32 -1.442695, %v509_v32  ;;  %v615_v37 = vadd.f32 %v1940_v26, %v614_v33 }
  0xae   : > { %v1944_v38 = vpop.eup %1943  ;;  %v597_v39 = vadd.f32 1.0, %v1942_v35 }
  0xaf   : > { %1945 = vpow2.f32 %v1825_v36  ;;  %v619_v41 = vsel %vm618_vm3, %v1940_v26, %v615_v37  ;;  %v627_v42 = vmul.f32 %v1944_v38, %v596_v27  ;;  %vm632_vm6 = vweird.f32 %v1944_v38 }
  0xb0   : > { %1947 = vrcp.f32 %v597_v39  ;;  %v624_v43 = vsel %vm621_vm5, %v623_v40, %v619_v41  ;;  %vm633_vm8 = vmor %vm631_vm7, %vm632_vm6  ;;  %v652_v61 = vand.u32 2147483648, %v597_v39  ;;  %v650_v0 = vand.u32 2147483647, %v597_v39 }
  0xb1   : > { %1838 = vmatmul.msk.f32.vlgmr.msra.gmra.mxu1 %vm863_vm4, %v624_v43  ;;  %v628_v44 = vsub.f32 1.0, %v627_v42  ;;  %vm646_vm11 = vweird.f32 %v597_v39 }
  0xb2   : > { %v511_v45 = vpop.f32.mrf.mxu0  ;;  %v653_v7 = vor.u32 1.1754944e-38, %v652_v61  ;;  %vm651_vm13 = vcmp.eq.f32.partialorder %v650_v0, 8.507059e+37 }
  0xb3   : > { %v512_v47 = vadd.f32 %v2312_v12, %v511_v45  ;;  %v629_v48 = vmul.f32 %v1944_v38, %v628_v44 }
  0xb5   : > { %v1946_v50 = vpop.eup %1945  ;;  %v1826_v51 = vmul.f32 -1.442695, %v512_v47  ;;  %v630_v52 = vadd.f32 %v1944_v38, %v629_v48 }
  0xb6   : > { %v1948_v53 = vpop.eup %1947  ;;  %v598_v54 = vadd.f32 1.0, %v1946_v50 }
  0xb7   : > { %1949 = vpow2.f32 %v1826_v51  ;;  %v634_v56 = vsel %vm633_vm8, %v1944_v38, %v630_v52  ;;  %v642_v57 = vmul.f32 %v1948_v53, %v597_v39  ;;  %vm647_vm10 = vweird.f32 %v1948_v53 }
  0xb8   : > { %1951 = vrcp.f32 %v598_v54  ;;  %v639_v58 = vsel %vm636_vm9, %v638_v55, %v634_v56  ;;  %vm648_vm12 = vmor %vm646_vm11, %vm647_vm10  ;;  %v667_v13 = vand.u32 2147483648, %v598_v54  ;;  %v665_v16 = vand.u32 2147483647, %v598_v54 }
  0xb9   : > { %1839 = vmatmul.msk.f32.gmra.mxu1 %vm863_vm4, %v639_v58  ;;  %v643_v59 = vsub.f32 1.0, %v642_v57  ;;  %vm661_vm15 = vweird.f32 %v598_v54 }
  0xba   : > { %v514_v60 = vpop.f32.mrf.mxu0  ;;  %v668_v22 = vor.u32 1.1754944e-38, %v667_v13  ;;  %vm666_vm1 = vcmp.eq.f32.partialorder %v665_v16, 8.507059e+37 }
  0xbb   : > { %v515_v62 = vadd.f32 %v2312_v12, %v514_v60  ;;  %v644_v63 = vmul.f32 %v1948_v53, %v643_v59 }
  0xbd   : > { %v1950_v1 = vpop.eup %1949  ;;  %v1827_v2 = vmul.f32 -1.442695, %v515_v62  ;;  %v645_v3 = vadd.f32 %v1948_v53, %v644_v63 }
  0xbe   : > { %v1952_v5 = vpop.eup %1951  ;;  %v599_v6 = vadd.f32 1.0, %v1950_v1 }
  0xbf   : > { %1953 = vpow2.f32 %v1827_v2  ;;  %v649_v4 = vsel %vm648_vm12, %v1948_v53, %v645_v3  ;;  %v657_v8 = vmul.f32 %v1952_v5, %v598_v54  ;;  %vm662_vm14 = vweird.f32 %v1952_v5 }
  0xc0   : > { %1955 = vrcp.f32 %v599_v6  ;;  %v654_v9 = vsel %vm651_vm13, %v653_v7, %v649_v4  ;;  %vm663_vm0 = vmor %vm661_vm15, %vm662_vm14  ;;  %v682_v28 = vand.u32 2147483648, %v599_v6  ;;  %v680_v31 = vand.u32 2147483647, %v599_v6  ;;  %v538_v7 = vpop.f32.mrf.mxu3 }
  0xc1   : > { %1840 = vmatmul.msk.f32.gmra.mxu1 %vm863_vm4, %v654_v9  ;;  %v658_v10 = vsub.f32 1.0, %v657_v8  ;;  %vm676_vm3 = vweird.f32 %v599_v6 }
  0xc2   : > { %v517_v11 = vpop.f32.mrf.mxu0  ;;  %v683_v37 = vor.u32 1.1754944e-38, %v682_v28  ;;  %vm681_vm6 = vcmp.eq.f32.partialorder %v680_v31, 8.507059e+37 }
  0xc3   : > { %v518_v14 = vadd.f32 %v2312_v12, %v517_v11  ;;  %v659_v15 = vmul.f32 %v1952_v5, %v658_v10 }
  0xc5   : > { %v1954_v17 = vpop.eup %1953  ;;  %v1828_v18 = vmul.f32 -1.442695, %v518_v14  ;;  %v660_v19 = vadd.f32 %v1952_v5, %v659_v15 }
  0xc6   : > { %v1956_v20 = vpop.eup %1955  ;;  %v600_v21 = vadd.f32 1.0, %v1954_v17 }
  0xc7   : > { %1957 = vpow2.f32 %v1828_v18  ;;  %v664_v23 = vsel %vm663_vm0, %v1952_v5, %v660_v19  ;;  %v672_v24 = vmul.f32 %v1956_v20, %v599_v6  ;;  %vm677_vm2 = vweird.f32 %v1956_v20 }
  0xc8   : > { %1959 = vrcp.f32 %v600_v21  ;;  %v669_v25 = vsel %vm666_vm1, %v668_v22, %v664_v23  ;;  %vm678_vm5 = vmor %vm676_vm3, %vm677_vm2  ;;  %v697_v43 = vand.u32 2147483648, %v600_v21  ;;  %v695_v46 = vand.u32 2147483647, %v600_v21 }
  0xc9   : > { %1841 = vmatmul.msk.f32.gmra.mxu1 %vm863_vm4, %v669_v25  ;;  %v673_v26 = vsub.f32 1.0, %v672_v24  ;;  %vm691_vm8 = vweird.f32 %v600_v21 }
  0xca   : > { %v520_v27 = vpop.f32.mrf.mxu0  ;;  %v698_v52 = vor.u32 1.1754944e-38, %v697_v43  ;;  %vm696_vm10 = vcmp.eq.f32.partialorder %v695_v46, 8.507059e+37 }
  0xcb   : > { %v521_v29 = vadd.f32 %v2312_v12, %v520_v27  ;;  %v674_v30 = vmul.f32 %v1956_v20, %v673_v26  ;;  %v541_v26 = vpop.f32.mrf.mxu3 }
  0xcd   : > { %v1958_v32 = vpop.eup %1957  ;;  %v1829_v33 = vmul.f32 -1.442695, %v521_v29  ;;  %v675_v34 = vadd.f32 %v1956_v20, %v674_v30 }
  0xce   : > { %v1960_v35 = vpop.eup %1959  ;;  %v601_v36 = vadd.f32 1.0, %v1958_v32 }
  0xcf   : > { %1961 = vpow2.f32 %v1829_v33  ;;  %v679_v38 = vsel %vm678_vm5, %v1956_v20, %v675_v34  ;;  %v687_v39 = vmul.f32 %v1960_v35, %v600_v21  ;;  %vm692_vm7 = vweird.f32 %v1960_v35 }
  0xd0   : > { %1963 = vrcp.f32 %v601_v36  ;;  %v684_v40 = vsel %vm681_vm6, %v683_v37, %v679_v38  ;;  %vm693_vm9 = vmor %vm691_vm8, %vm692_vm7  ;;  %v712_v58 = vand.u32 2147483648, %v601_v36  ;;  %v710_v61 = vand.u32 2147483647, %v601_v36 }
  0xd1   : > { %1842 = vmatmul.msk.f32.gmra.mxu1 %vm863_vm4, %v684_v40  ;;  %v688_v41 = vsub.f32 1.0, %v687_v39  ;;  %vm706_vm12 = vweird.f32 %v601_v36  ;;  %v539_v21 = vadd.f32 %v2312_v12, %v538_v7  ;;  %v542_v39 = vadd.f32 %v2312_v12, %v541_v26 }
  0xd2   : > { %v523_v42 = vpop.f32.mrf.mxu0  ;;  %v713_v3 = vor.u32 1.1754944e-38, %v712_v58  ;;  %vm711_vm14 = vcmp.eq.f32.partialorder %v710_v61, 8.507059e+37 }
  0xd3   : > { %v524_v44 = vadd.f32 %v2312_v12, %v523_v42  ;;  %v689_v45 = vmul.f32 %v1960_v35, %v688_v41  ;;  %v1835_v28 = vmul.f32 -1.442695, %v539_v21 }
  0xd5   : > { %v1962_v47 = vpop.eup %1961  ;;  %v1830_v48 = vmul.f32 -1.442695, %v524_v44  ;;  %v690_v49 = vadd.f32 %v1960_v35, %v689_v45  ;;  %v1836_v45 = vmul.f32 -1.442695, %v542_v39 }
  0xd6   : > { %v1964_v50 = vpop.eup %1963  ;;  %v602_v51 = vadd.f32 1.0, %v1962_v47 }
  0xd7   : > { %1965 = vpow2.f32 %v1830_v48  ;;  %v694_v53 = vsel %vm693_vm9, %v1960_v35, %v690_v49  ;;  %v702_v54 = vmul.f32 %v1964_v50, %v601_v36  ;;  %vm707_vm11 = vweird.f32 %v1964_v50 }
  0xd8   : > { %1967 = vrcp.f32 %v602_v51  ;;  %v699_v55 = vsel %vm696_vm10, %v698_v52, %v694_v53  ;;  %vm708_vm13 = vmor %vm706_vm12, %vm707_vm11  ;;  %v727_v10 = vand.u32 2147483648, %v602_v51  ;;  %v725_v14 = vand.u32 2147483647, %v602_v51 }
  0xd9   : > { %1843 = vmatmul.msk.f32.gmra.mxu1 %vm863_vm4, %v699_v55  ;;  %v703_v56 = vsub.f32 1.0, %v702_v54  ;;  %vm721_vm0 = vweird.f32 %v602_v51 }
  0xda   : > { %v526_v57 = vpop.f32.mrf.mxu0  ;;  %v728_v20 = vor.u32 1.1754944e-38, %v727_v10  ;;  %vm726_vm2 = vcmp.eq.f32.partialorder %v725_v14, 8.507059e+37 }
  0xdb   : > { %v527_v59 = vadd.f32 %v2312_v12, %v526_v57  ;;  %v704_v60 = vmul.f32 %v1964_v50, %v703_v56 }
  0xdd   : > { %v1966_v62 = vpop.eup %1965  ;;  %v1831_v63 = vmul.f32 -1.442695, %v527_v59  ;;  %v705_v0 = vadd.f32 %v1964_v50, %v704_v60 }
  0xde   : > { %v1968_v1 = vpop.eup %1967  ;;  %v603_v2 = vadd.f32 1.0, %v1966_v62 }
  0xdf   : > { %1969 = vpow2.f32 %v1831_v63  ;;  %v709_v5 = vsel %vm708_vm13, %v1964_v50, %v705_v0  ;;  %v717_v6 = vmul.f32 %v1968_v1, %v602_v51  ;;  %vm722_vm15 = vweird.f32 %v1968_v1  ;;  %v544_v50 = vpop.f32.mrf.mxu3 }
  0xe0   : > { %1971 = vrcp.f32 %v603_v2  ;;  %v714_v4 = vsel %vm711_vm14, %v713_v3, %v709_v5  ;;  %vm723_vm1 = vmor %vm721_vm0, %vm722_vm15  ;;  %v742_v29 = vand.u32 2147483648, %v603_v2  ;;  %v740_v32 = vand.u32 2147483647, %v603_v2 }
  0xe1   : > { %1844 = vmatmul.msk.f32.gmra.mxu1 %vm863_vm4, %v714_v4  ;;  %v718_v8 = vsub.f32 1.0, %v717_v6  ;;  %vm736_vm5 = vweird.f32 %v603_v2  ;;  %v545_v58 = vadd.f32 %v2312_v12, %v544_v50 }
  0xe2   : > { %v529_v9 = vpop.f32.mrf.mxu0  ;;  %v743_v38 = vor.u32 1.1754944e-38, %v742_v29  ;;  %vm741_vm7 = vcmp.eq.f32.partialorder %v740_v32, 8.507059e+37 }
  0xe3   : > { %v530_v11 = vadd.f32 %v2312_v12, %v529_v9  ;;  %v719_v13 = vmul.f32 %v1968_v1, %v718_v8 }
  0xe5   : > { %v1970_v15 = vpop.eup %1969  ;;  %v1832_v16 = vmul.f32 -1.442695, %v530_v11  ;;  %v720_v17 = vadd.f32 %v1968_v1, %v719_v13 }
  0xe6   : > { %v1972_v18 = vpop.eup %1971  ;;  %v604_v19 = vadd.f32 1.0, %v1970_v15 }
  0xe7   : > { %1973 = vpow2.f32 %v1832_v16  ;;  %v724_v22 = vsel %vm723_vm1, %v1968_v1, %v720_v17  ;;  %v732_v23 = vmul.f32 %v1972_v18, %v603_v2  ;;  %vm737_vm3 = vweird.f32 %v1972_v18 }
  0xe8   : > { %1975 = vrcp.f32 %v604_v19  ;;  %v729_v24 = vsel %vm726_vm2, %v728_v20, %v724_v22  ;;  %vm738_vm6 = vmor %vm736_vm5, %vm737_vm3  ;;  %v757_v46 = vand.u32 2147483648, %v604_v19  ;;  %v755_v49 = vand.u32 2147483647, %v604_v19 }
  0xe9   : > { %1845 = vmatmul.msk.f32.gmra.mxu1 %vm863_vm4, %v729_v24  ;;  %v733_v25 = vsub.f32 1.0, %v732_v23  ;;  %1977 = vpow2.f32 %v1835_v28  ;;  %vm751_vm9 = vweird.f32 %v604_v19  ;;  %v1837_v1 = vmul.f32 -1.442695, %v545_v58 }
  0xea   : > { %v532_v27 = vpop.f32.mrf.mxu0  ;;  %v758_v57 = vor.u32 1.1754944e-38, %v757_v46  ;;  %vm756_vm11 = vcmp.eq.f32.partialorder %v755_v49, 8.507059e+37 }
  0xeb   : > { %v533_v30 = vadd.f32 %v2312_v12, %v532_v27  ;;  %v734_v31 = vmul.f32 %v1972_v18, %v733_v25 }
  0xed   : > { %v1974_v33 = vpop.eup %1973  ;;  %v1833_v34 = vmul.f32 -1.442695, %v533_v30  ;;  %v735_v35 = vadd.f32 %v1972_v18, %v734_v31 }
  0xee   : > { %v1976_v36 = vpop.eup %1975  ;;  %v605_v37 = vadd.f32 1.0, %v1974_v33 }
  0xef   : > { %1979 = vpow2.f32 %v1833_v34  ;;  %v739_v40 = vsel %vm738_vm6, %v1972_v18, %v735_v35  ;;  %v747_v41 = vmul.f32 %v1976_v36, %v604_v19  ;;  %vm752_vm8 = vweird.f32 %v1976_v36  ;;  %v1978_v51 = vpop.eup %1977 }
  0xf0   : > { %1981 = vrcp.f32 %v605_v37  ;;  %v744_v42 = vsel %vm741_vm7, %v743_v38, %v739_v40  ;;  %vm753_vm10 = vmor %vm751_vm9, %vm752_vm8  ;;  %v2342_v61 = vadd.f32 1.0, %v1978_v51  ;;  %v772_v0 = vand.u32 2147483648, %v605_v37 }
  0xf1   : > { %1846 = vmatmul.msk.f32.gmra.mxu1 %vm863_vm4, %v744_v42  ;;  %v748_v43 = vsub.f32 1.0, %v747_v41  ;;  %1983 = vpow2.f32 %v1836_v45  ;;  %v770_v3 = vand.u32 2147483647, %v605_v37  ;;  %vm766_vm13 = vweird.f32 %v605_v37 }
  0xf2   : > { %v535_v44 = vpop.f32.mrf.mxu0  ;;  %v773_v8 = vor.u32 1.1754944e-38, %v772_v0  ;;  %vm811_vm9 = vweird.f32 %v2342_v61  ;;  %v817_v40 = vand.u32 2147483648, %v2342_v61  ;;  %v815_v42 = vand.u32 2147483647, %v2342_v61 }
  0xf3   : > { %v536_v47 = vadd.f32 %v2312_v12, %v535_v44  ;;  %v749_v48 = vmul.f32 %v1976_v36, %v748_v43  ;;  %vm771_vm15 = vcmp.eq.f32.partialorder %v770_v3, 8.507059e+37  ;;  %v1284_v3 = vld [vmem:[%s2500_s7 + $0x18] sm:$0xff] }
  0xf4   : > { %v818_v45 = vor.u32 1.1754944e-38, %v817_v40 }
  0xf5   : > { %v1980_v52 = vpop.eup %1979  ;;  %v1834_v53 = vmul.f32 -1.442695, %v536_v47  ;;  %v750_v54 = vadd.f32 %v1976_v36, %v749_v48 }
  0xf6   : > { %v1982_v55 = vpop.eup %1981  ;;  %v606_v56 = vadd.f32 1.0, %v1980_v52 }
  0xf7   : > { %1985 = vpow2.f32 %v1834_v53  ;;  %v754_v59 = vsel %vm753_vm10, %v1976_v36, %v750_v54  ;;  %v762_v60 = vmul.f32 %v1982_v55, %v605_v37  ;;  %vm767_vm12 = vweird.f32 %v1982_v55  ;;  %v1984_v5 = vpop.eup %1983 }
  0xf8   : > { %1987 = vrcp.f32 %v606_v56  ;;  %v759_v62 = vsel %vm756_vm11, %v758_v57, %v754_v59  ;;  %vm768_vm14 = vmor %vm766_vm13, %vm767_vm12  ;;  %v2346_v11 = vadd.f32 1.0, %v1984_v5  ;;  %v787_v16 = vand.u32 2147483648, %v606_v56  ;;  %v1288_v57 = vld [vmem:[%s2500_s7 + $0x38] sm:$0xff] }
  0xf9   : > { %1847 = vmatmul.msk.f32.gmra.mxu1 %vm863_vm4, %v759_v62  ;;  %v763_v63 = vsub.f32 1.0, %v762_v60  ;;  %1989 = vrcp.f32 %v2342_v61  ;;  %v785_v18 = vand.u32 2147483647, %v606_v56  ;;  %vm781_vm1 = vweird.f32 %v606_v56  ;;  %1349 = vmatpush.msra.mxu2 %v1288_v57  ;;  %v1287_v60 = vld [vmem:[%s2500_s7 + $0x30] sm:$0xff] }
  0xfa   : > { %1991 = vpow2.f32 %v1837_v1  ;;  %v788_v23 = vor.u32 1.1754944e-38, %v787_v16  ;;  %vm816_vm12 = vcmp.eq.f32.partialorder %v815_v42, 8.507059e+37  ;;  %vm826_vm13 = vweird.f32 %v2346_v11  ;;  %1916 = vmatpush.msra.mxu3 %v1288_v57  ;;  %v1285_v1 = vld [vmem:[%s2500_s7 + $0x20] sm:$0xff] }
  0xfb   : > { %v764_v2 = vmul.f32 %v1982_v55, %v763_v63  ;;  %vm786_vm3 = vcmp.eq.f32.partialorder %v785_v18, 8.507059e+37  ;;  %v832_v50 = vand.u32 2147483648, %v2346_v11  ;;  %v830_v52 = vand.u32 2147483647, %v2346_v11  ;;  %1350 = vmatpush.msra.mxu2 %v1287_v60  ;;  %v1286_v63 = vld [vmem:[%s2500_s7 + $0x28] sm:$0xff] }
  0xfc   : > { %1917 = vmatpush.msra.mxu3 %v1287_v60 }
  0xfd   : > { %v1986_v12 = vpop.eup %1985  ;;  %v765_v6 = vadd.f32 %v1982_v55, %v764_v2  ;;  %v833_v54 = vor.u32 1.1754944e-38, %v832_v50  ;;  %1351 = vmatpush.msra.mxu2 %v1286_v63 }
  0xfe   : > { %v1988_v7 = vpop.eup %1987  ;;  %v607_v4 = vadd.f32 1.0, %v1986_v12  ;;  %1918 = vmatpush.msra.mxu3 %v1286_v63  ;;  %v1283_v12 = vld [vmem:[%s2500_s7 + $0x10] sm:$0xff] }
  0xff   : > { %v769_v9 = vsel %vm768_vm14, %v1982_v55, %v765_v6  ;;  %v777_v10 = vmul.f32 %v1988_v7, %v606_v56  ;;  %v1990_v15 = vpop.eup %1989  ;;  %vm782_vm0 = vweird.f32 %v1988_v7  ;;  %1352 = vmatpush.msra.mxu2 %v1285_v1  ;;  %v1282_v6 = vld [vmem:[%s2500_s7 + $0x8] sm:$0xff] }
 0x100   : > { %1993 = vrcp.f32 %v607_v4  ;;  %v774_v13 = vsel %vm771_vm15, %v773_v8, %v769_v9  ;;  %v1992_v19 = vpop.eup %1991  ;;  %v807_v21 = vmul.f32 %v1990_v15, %v2342_v61  ;;  %vm783_vm2 = vmor %vm781_vm1, %vm782_vm0  ;;  %v802_v31 = vand.u32 2147483648, %v607_v4  ;;  %1919 = vmatpush.msra.mxu3 %v1285_v1 }
 0x101   : > { %1848 = vmatmul.msk.f32.gmra.mxu1 %vm863_vm4, %v774_v13  ;;  %v778_v14 = vsub.f32 1.0, %v777_v10  ;;  %1995 = vrcp.f32 %v2346_v11  ;;  %v2351_v26 = vadd.f32 1.0, %v1992_v19  ;;  %v800_v33 = vand.u32 2147483647, %v607_v4  ;;  %1353 = vmatpush.msra.mxu2 %v1284_v3 }
 0x102   : > { %v808_v29 = vsub.f32 1.0, %v807_v21  ;;  %vm796_vm6 = vweird.f32 %v607_v4  ;;  %v803_v37 = vor.u32 1.1754944e-38, %v802_v31  ;;  %vm812_vm10 = vweird.f32 %v1990_v15  ;;  %1920 = vmatpush.msra.mxu3 %v1284_v3 }
 0x103   : > { %v779_v17 = vmul.f32 %v1988_v7, %v778_v14  ;;  %1997 = vrcp.f32 %v2351_v26  ;;  %vm801_vm8 = vcmp.eq.f32.partialorder %v800_v33, 8.507059e+37  ;;  %vm813_vm11 = vmor %vm811_vm9, %vm812_vm10  ;;  %vm831_vm0 = vcmp.eq.f32.partialorder %v830_v52, 8.507059e+37  ;;  %1354 = vmatpush.msra.mxu2 %v1283_v12 }
 0x104   : > { %v809_v35 = vmul.f32 %v1990_v15, %v808_v29  ;;  %vm841_vm1 = vweird.f32 %v2351_v26  ;;  %v847_v59 = vand.u32 2147483648, %v2351_v26  ;;  %v845_v62 = vand.u32 2147483647, %v2351_v26  ;;  %1921 = vmatpush.msra.mxu3 %v1283_v12 }
 0x105   : > { %v780_v20 = vadd.f32 %v1988_v7, %v779_v17  ;;  %1355 = vmatpush.msra.mxu2 %v1282_v6 }
 0x106   : > { %v1994_v22 = vpop.eup %1993  ;;  %v810_v41 = vadd.f32 %v1990_v15, %v809_v35  ;;  %v848_v0 = vor.u32 1.1754944e-38, %v847_v59  ;;  %1922 = vmatpush.msra.mxu3 %v1282_v6 }
 0x107   : > { %v784_v24 = vsel %vm783_vm2, %v1988_v7, %v780_v20  ;;  %v792_v25 = vmul.f32 %v1994_v22, %v607_v4  ;;  %v1996_v30 = vpop.eup %1995  ;;  %vm797_vm5 = vweird.f32 %v1994_v22  ;;  %v2394_v7 = vld [vmem:[%s2499_s6] ss:$0 sm:$0xff] }
 0x108   : > { %v789_v27 = vsel %vm786_vm3, %v788_v23, %v784_v24  ;;  %v822_v36 = vmul.f32 %v1996_v30, %v2346_v11  ;;  %vm798_vm7 = vmor %vm796_vm6, %vm797_vm5  ;;  %v814_v46 = vsel %vm813_vm11, %v1990_v15, %v810_v41  ;;  %vm827_vm14 = vweird.f32 %v1996_v30  ;;  %v1281_v4 = vld [vmem:[%s2500_s7] sm:$0xff] }
 0x109   : > { %1849 = vmatmul.msk.f32.gmra.mxu1 %vm863_vm4, %v789_v27  ;;  %v793_v28 = vsub.f32 1.0, %v792_v25  ;;  %v1998_v44 = vpop.eup %1997  ;;  %v819_v49 = vsel %vm816_vm12, %v818_v45, %v814_v46  ;;  %vm828_vm15 = vmor %vm826_vm13, %vm827_vm14  ;;  %vm846_vm5 = vcmp.eq.f32.partialorder %v845_v62, 8.507059e+37  ;;  %1356 = vmatpush.msra.mxu2 %v1281_v4 }
 0x10a   : > { %v823_v43 = vsub.f32 1.0, %v822_v36  ;;  %v837_v48 = vmul.f32 %v1998_v44, %v2351_v26  ;;  %vm842_vm2 = vweird.f32 %v1998_v44  ;;  %1923 = vmatpush.msra.mxu3 %v1281_v4 }
 0x10b   : > { %v794_v32 = vmul.f32 %v1994_v22, %v793_v28  ;;  %vm843_vm3 = vmor %vm841_vm1, %vm842_vm2 }
 0x10c   : > { %v824_v47 = vmul.f32 %v1996_v30, %v823_v43  ;;  %v838_v53 = vsub.f32 1.0, %v837_v48 }
 0x10d   : > { %v795_v34 = vadd.f32 %v1994_v22, %v794_v32 }
 0x10e   : > { %v825_v51 = vadd.f32 %v1996_v30, %v824_v47  ;;  %v839_v56 = vmul.f32 %v1998_v44, %v838_v53 }
 0x10f   : > { %v799_v38 = vsel %vm798_vm7, %v1994_v22, %v795_v34 }
 0x110   : > { %v804_v39 = vsel %vm801_vm8, %v803_v37, %v799_v38  ;;  %v829_v55 = vsel %vm828_vm15, %v1996_v30, %v825_v51  ;;  %v840_v61 = vadd.f32 %v1998_v44, %v839_v56 }
 0x111   : > { %1850 = vmatmul.msk.f32.vlgmr.msrb.gmra.mxu3 %vm863_vm4, %v804_v39  ;;  %v834_v58 = vsel %vm831_vm0, %v833_v54, %v829_v55 }
 0x112   : > { %v844_v2 = vsel %vm843_vm3, %v1998_v44, %v840_v61 }
 0x113   : > { %v849_v5 = vsel %vm846_vm5, %v848_v0, %v844_v2 }
 0x119   : > { %1851 = vmatmul.msk.f32.gmra.mxu3 %vm863_vm4, %v819_v49 }
 0x121   : > { %1852 = vmatmul.msk.f32.gmra.mxu3 %vm863_vm4, %v834_v58 }
 0x129   : > { %1853 = vmatmul.msk.f32.gmra.mxu3 %vm863_vm4, %v849_v5 }
 0x12e   : > { %v929_v8 = vpop.f32.mrf.mxu1 }
 0x12f   : > { %v930_v9 = vadd.f32 %v2394_v7, %v929_v8 }
 0x131   : > { %v1854_v10 = vmul.f32 -1.442695, %v930_v9 }
 0x133   : > { %1999 = vpow2.f32 %v1854_v10 }
 0x136   : > { %v932_v11 = vpop.f32.mrf.mxu1 }
 0x137   : > { %v933_v13 = vadd.f32 %v2394_v7, %v932_v11 }
 0x139   : > { %v2000_v14 = vpop.eup %1999  ;;  %v1855_v15 = vmul.f32 -1.442695, %v933_v13 }
 0x13a   : > { %v1025_v16 = vadd.f32 1.0, %v2000_v14 }
 0x13b   : > { %2001 = vpow2.f32 %v1855_v15 }
 0x13c   : > { %2003 = vrcp.f32 %v1025_v16  ;;  %v1052_v26 = vand.u32 2147483648, %v1025_v16  ;;  %v1050_v29 = vand.u32 2147483647, %v1025_v16  ;;  %vm1046_vm7 = vweird.f32 %v1025_v16 }
 0x13e   : > { %v935_v17 = vpop.f32.mrf.mxu1  ;;  %v1053_v35 = vor.u32 1.1754944e-38, %v1052_v26  ;;  %vm1051_vm9 = vcmp.eq.f32.partialorder %v1050_v29, 8.507059e+37 }
 0x13f   : > { %v936_v18 = vadd.f32 %v2394_v7, %v935_v17 }
 0x141   : > { %v2002_v19 = vpop.eup %2001  ;;  %v1856_v20 = vmul.f32 -1.442695, %v936_v18 }
 0x142   : > { %v2004_v21 = vpop.eup %2003  ;;  %v1026_v22 = vadd.f32 1.0, %v2002_v19 }
 0x143   : > { %2005 = vpow2.f32 %v1856_v20  ;;  %v1042_v23 = vmul.f32 %v2004_v21, %v1025_v16  ;;  %vm1047_vm6 = vweird.f32 %v2004_v21 }
 0x144   : > { %2007 = vrcp.f32 %v1026_v22  ;;  %vm1048_vm8 = vmor %vm1046_vm7, %vm1047_vm6  ;;  %v1067_v41 = vand.u32 2147483648, %v1026_v22  ;;  %v1065_v44 = vand.u32 2147483647, %v1026_v22  ;;  %vm1061_vm11 = vweird.f32 %v1026_v22 }
 0x145   : > { %v1043_v24 = vsub.f32 1.0, %v1042_v23 }
 0x146   : > { %v938_v25 = vpop.f32.mrf.mxu1  ;;  %v1068_v50 = vor.u32 1.1754944e-38, %v1067_v41  ;;  %vm1066_vm13 = vcmp.eq.f32.partialorder %v1065_v44, 8.507059e+37 }
 0x147   : > { %v939_v27 = vadd.f32 %v2394_v7, %v938_v25  ;;  %v1044_v28 = vmul.f32 %v2004_v21, %v1043_v24 }
 0x149   : > { %v2006_v30 = vpop.eup %2005  ;;  %v1857_v31 = vmul.f32 -1.442695, %v939_v27  ;;  %v1045_v32 = vadd.f32 %v2004_v21, %v1044_v28 }
 0x14a   : > { %v2008_v33 = vpop.eup %2007  ;;  %v1027_v34 = vadd.f32 1.0, %v2006_v30 }
 0x14b   : > { %2009 = vpow2.f32 %v1857_v31  ;;  %v1049_v36 = vsel %vm1048_vm8, %v2004_v21, %v1045_v32  ;;  %v1057_v37 = vmul.f32 %v2008_v33, %v1026_v22  ;;  %vm1062_vm10 = vweird.f32 %v2008_v33 }
 0x14c   : > { %2011 = vrcp.f32 %v1027_v34  ;;  %v1054_v38 = vsel %vm1051_vm9, %v1053_v35, %v1049_v36  ;;  %vm1063_vm12 = vmor %vm1061_vm11, %vm1062_vm10  ;;  %v1082_v56 = vand.u32 2147483648, %v1027_v34  ;;  %v1080_v59 = vand.u32 2147483647, %v1027_v34 }
 0x14d   : > { %1870 = vmatmul.msk.f32.vlgmr.msra.gmra.mxu2 %vm863_vm4, %v1054_v38  ;;  %v1058_v39 = vsub.f32 1.0, %v1057_v37  ;;  %vm1076_vm15 = vweird.f32 %v1027_v34 }
 0x14e   : > { %v941_v40 = vpop.f32.mrf.mxu1  ;;  %v1083_v1 = vor.u32 1.1754944e-38, %v1082_v56  ;;  %vm1081_vm1 = vcmp.eq.f32.partialorder %v1080_v59, 8.507059e+37 }
 0x14f   : > { %v942_v42 = vadd.f32 %v2394_v7, %v941_v40  ;;  %v1059_v43 = vmul.f32 %v2008_v33, %v1058_v39 }
 0x151   : > { %v2010_v45 = vpop.eup %2009  ;;  %v1858_v46 = vmul.f32 -1.442695, %v942_v42  ;;  %v1060_v47 = vadd.f32 %v2008_v33, %v1059_v43 }
 0x152   : > { %v2012_v48 = vpop.eup %2011  ;;  %v1028_v49 = vadd.f32 1.0, %v2010_v45 }
 0x153   : > { %2013 = vpow2.f32 %v1858_v46  ;;  %v1064_v51 = vsel %vm1063_vm12, %v2008_v33, %v1060_v47  ;;  %v1072_v52 = vmul.f32 %v2012_v48, %v1027_v34  ;;  %vm1077_vm14 = vweird.f32 %v2012_v48 }
 0x154   : > { %2015 = vrcp.f32 %v1028_v49  ;;  %v1069_v53 = vsel %vm1066_vm13, %v1068_v50, %v1064_v51  ;;  %vm1078_vm0 = vmor %vm1076_vm15, %vm1077_vm14  ;;  %v1097_v4 = vand.u32 2147483648, %v1028_v49  ;;  %v1095_v10 = vand.u32 2147483647, %v1028_v49 }
 0x155   : > { %1871 = vmatmul.msk.f32.gmra.mxu2 %vm863_vm4, %v1069_v53  ;;  %v1073_v54 = vsub.f32 1.0, %v1072_v52  ;;  %vm1091_vm3 = vweird.f32 %v1028_v49 }
 0x156   : > { %v944_v55 = vpop.f32.mrf.mxu1  ;;  %v1098_v17 = vor.u32 1.1754944e-38, %v1097_v4  ;;  %vm1096_vm6 = vcmp.eq.f32.partialorder %v1095_v10, 8.507059e+37 }
 0x157   : > { %v945_v57 = vadd.f32 %v2394_v7, %v944_v55  ;;  %v1074_v58 = vmul.f32 %v2012_v48, %v1073_v54 }
 0x159   : > { %v2014_v60 = vpop.eup %2013  ;;  %v1859_v61 = vmul.f32 -1.442695, %v945_v57  ;;  %v1075_v62 = vadd.f32 %v2012_v48, %v1074_v58 }
 0x15a   : > { %v2016_v63 = vpop.eup %2015  ;;  %v1029_v0 = vadd.f32 1.0, %v2014_v60 }
 0x15b   : > { %2017 = vpow2.f32 %v1859_v61  ;;  %v1079_v2 = vsel %vm1078_vm0, %v2012_v48, %v1075_v62  ;;  %v1087_v3 = vmul.f32 %v2016_v63, %v1028_v49  ;;  %vm1092_vm2 = vweird.f32 %v2016_v63 }
 0x15c   : > { %2019 = vrcp.f32 %v1029_v0  ;;  %v1084_v5 = vsel %vm1081_vm1, %v1083_v1, %v1079_v2  ;;  %vm1093_vm5 = vmor %vm1091_vm3, %vm1092_vm2  ;;  %v1112_v23 = vand.u32 2147483648, %v1029_v0  ;;  %v1110_v26 = vand.u32 2147483647, %v1029_v0 }
 0x15d   : > { %1872 = vmatmul.msk.f32.gmra.mxu2 %vm863_vm4, %v1084_v5  ;;  %v1088_v12 = vsub.f32 1.0, %v1087_v3  ;;  %vm1106_vm8 = vweird.f32 %v1029_v0 }
 0x15e   : > { %v947_v6 = vpop.f32.mrf.mxu1  ;;  %v1113_v32 = vor.u32 1.1754944e-38, %v1112_v23  ;;  %vm1111_vm10 = vcmp.eq.f32.partialorder %v1110_v26, 8.507059e+37 }
 0x15f   : > { %v948_v8 = vadd.f32 %v2394_v7, %v947_v6  ;;  %v1089_v9 = vmul.f32 %v2016_v63, %v1088_v12 }
 0x161   : > { %v2018_v11 = vpop.eup %2017  ;;  %v1860_v13 = vmul.f32 -1.442695, %v948_v8  ;;  %v1090_v14 = vadd.f32 %v2016_v63, %v1089_v9 }
 0x162   : > { %v2020_v15 = vpop.eup %2019  ;;  %v1030_v16 = vadd.f32 1.0, %v2018_v11 }
 0x163   : > { %2021 = vpow2.f32 %v1860_v13  ;;  %v1094_v18 = vsel %vm1093_vm5, %v2016_v63, %v1090_v14  ;;  %v1102_v19 = vmul.f32 %v2020_v15, %v1029_v0  ;;  %vm1107_vm7 = vweird.f32 %v2020_v15 }
 0x164   : > { %2023 = vrcp.f32 %v1030_v16  ;;  %v1099_v20 = vsel %vm1096_vm6, %v1098_v17, %v1094_v18  ;;  %vm1108_vm9 = vmor %vm1106_vm8, %vm1107_vm7  ;;  %v1127_v38 = vand.u32 2147483648, %v1030_v16  ;;  %v1125_v41 = vand.u32 2147483647, %v1030_v16 }
 0x165   : > { %1873 = vmatmul.msk.f32.gmra.mxu2 %vm863_vm4, %v1099_v20  ;;  %v1103_v21 = vsub.f32 1.0, %v1102_v19  ;;  %vm1121_vm12 = vweird.f32 %v1030_v16 }
 0x166   : > { %v950_v22 = vpop.f32.mrf.mxu1  ;;  %v1128_v47 = vor.u32 1.1754944e-38, %v1127_v38  ;;  %vm1126_vm14 = vcmp.eq.f32.partialorder %v1125_v41, 8.507059e+37 }
 0x167   : > { %v951_v24 = vadd.f32 %v2394_v7, %v950_v22  ;;  %v1104_v25 = vmul.f32 %v2020_v15, %v1103_v21 }
 0x169   : > { %v2022_v27 = vpop.eup %2021  ;;  %v1861_v28 = vmul.f32 -1.442695, %v951_v24  ;;  %v1105_v29 = vadd.f32 %v2020_v15, %v1104_v25 }
 0x16a   : > { %v2024_v30 = vpop.eup %2023  ;;  %v1031_v31 = vadd.f32 1.0, %v2022_v27 }
 0x16b   : > { %2025 = vpow2.f32 %v1861_v28  ;;  %v1109_v33 = vsel %vm1108_vm9, %v2020_v15, %v1105_v29  ;;  %v1117_v34 = vmul.f32 %v2024_v30, %v1030_v16  ;;  %vm1122_vm11 = vweird.f32 %v2024_v30 }
 0x16c   : > { %2027 = vrcp.f32 %v1031_v31  ;;  %v1114_v35 = vsel %vm1111_vm10, %v1113_v32, %v1109_v33  ;;  %vm1123_vm13 = vmor %vm1121_vm12, %vm1122_vm11  ;;  %v1142_v53 = vand.u32 2147483648, %v1031_v31  ;;  %v1140_v56 = vand.u32 2147483647, %v1031_v31 }
 0x16d   : > { %1874 = vmatmul.msk.f32.gmra.mxu2 %vm863_vm4, %v1114_v35  ;;  %v1118_v36 = vsub.f32 1.0, %v1117_v34  ;;  %vm1136_vm0 = vweird.f32 %v1031_v31 }
 0x16e   : > { %v953_v37 = vpop.f32.mrf.mxu1  ;;  %v1143_v62 = vor.u32 1.1754944e-38, %v1142_v53  ;;  %vm1141_vm2 = vcmp.eq.f32.partialorder %v1140_v56, 8.507059e+37 }
 0x16f   : > { %v954_v39 = vadd.f32 %v2394_v7, %v953_v37  ;;  %v1119_v40 = vmul.f32 %v2024_v30, %v1118_v36 }
 0x171   : > { %v2026_v42 = vpop.eup %2025  ;;  %v1862_v43 = vmul.f32 -1.442695, %v954_v39  ;;  %v1120_v44 = vadd.f32 %v2024_v30, %v1119_v40 }
 0x172   : > { %v2028_v45 = vpop.eup %2027  ;;  %v1032_v46 = vadd.f32 1.0, %v2026_v42 }
 0x173   : > { %2029 = vpow2.f32 %v1862_v43  ;;  %v1124_v48 = vsel %vm1123_vm13, %v2024_v30, %v1120_v44  ;;  %v1132_v49 = vmul.f32 %v2028_v45, %v1031_v31  ;;  %vm1137_vm15 = vweird.f32 %v2028_v45 }
 0x174   : > { %2031 = vrcp.f32 %v1032_v46  ;;  %v1129_v50 = vsel %vm1126_vm14, %v1128_v47, %v1124_v48  ;;  %vm1138_vm1 = vmor %vm1136_vm0, %vm1137_vm15  ;;  %v1157_v5 = vand.u32 2147483648, %v1032_v46  ;;  %v1155_v4 = vand.u32 2147483647, %v1032_v46 }
 0x175   : > { %1875 = vmatmul.msk.f32.gmra.mxu2 %vm863_vm4, %v1129_v50  ;;  %v1133_v51 = vsub.f32 1.0, %v1132_v49  ;;  %vm1151_vm5 = vweird.f32 %v1032_v46 }
 0x176   : > { %v956_v52 = vpop.f32.mrf.mxu1  ;;  %v1158_v14 = vor.u32 1.1754944e-38, %v1157_v5  ;;  %vm1156_vm7 = vcmp.eq.f32.partialorder %v1155_v4, 8.507059e+37 }
 0x177   : > { %v957_v54 = vadd.f32 %v2394_v7, %v956_v52  ;;  %v1134_v55 = vmul.f32 %v2028_v45, %v1133_v51 }
 0x179   : > { %v2030_v57 = vpop.eup %2029  ;;  %v1863_v58 = vmul.f32 -1.442695, %v957_v54  ;;  %v1135_v59 = vadd.f32 %v2028_v45, %v1134_v55 }
 0x17a   : > { %v2032_v60 = vpop.eup %2031  ;;  %v1033_v61 = vadd.f32 1.0, %v2030_v57 }
 0x17b   : > { %2033 = vpow2.f32 %v1863_v58  ;;  %v1139_v63 = vsel %vm1138_vm1, %v2028_v45, %v1135_v59  ;;  %v1147_v0 = vmul.f32 %v2032_v60, %v1032_v46  ;;  %vm1152_vm3 = vweird.f32 %v2032_v60 }
 0x17c   : > { %2035 = vrcp.f32 %v1033_v61  ;;  %v1144_v1 = vsel %vm1141_vm2, %v1143_v62, %v1139_v63  ;;  %vm1153_vm6 = vmor %vm1151_vm5, %vm1152_vm3  ;;  %v1172_v20 = vand.u32 2147483648, %v1033_v61  ;;  %v1170_v23 = vand.u32 2147483647, %v1033_v61 }
 0x17d   : > { %1876 = vmatmul.msk.f32.gmra.mxu2 %vm863_vm4, %v1144_v1  ;;  %v1148_v2 = vsub.f32 1.0, %v1147_v0  ;;  %vm1166_vm9 = vweird.f32 %v1033_v61 }
 0x17e   : > { %v959_v3 = vpop.f32.mrf.mxu1  ;;  %v1173_v29 = vor.u32 1.1754944e-38, %v1172_v20  ;;  %vm1171_vm11 = vcmp.eq.f32.partialorder %v1170_v23, 8.507059e+37 }
 0x17f   : > { %v960_v12 = vadd.f32 %v2394_v7, %v959_v3  ;;  %v1149_v6 = vmul.f32 %v2032_v60, %v1148_v2 }
 0x181   : > { %v2034_v8 = vpop.eup %2033  ;;  %v1864_v9 = vmul.f32 -1.442695, %v960_v12  ;;  %v1150_v10 = vadd.f32 %v2032_v60, %v1149_v6 }
 0x182   : > { %v2036_v11 = vpop.eup %2035  ;;  %v1034_v13 = vadd.f32 1.0, %v2034_v8 }
 0x183   : > { %2037 = vpow2.f32 %v1864_v9  ;;  %v1154_v15 = vsel %vm1153_vm6, %v2032_v60, %v1150_v10  ;;  %v1162_v16 = vmul.f32 %v2036_v11, %v1033_v61  ;;  %vm1167_vm8 = vweird.f32 %v2036_v11 }
 0x184   : > { %2039 = vrcp.f32 %v1034_v13  ;;  %v1159_v17 = vsel %vm1156_vm7, %v1158_v14, %v1154_v15  ;;  %vm1168_vm10 = vmor %vm1166_vm9, %vm1167_vm8  ;;  %v1187_v34 = vand.u32 2147483648, %v1034_v13  ;;  %v1185_v36 = vand.u32 2147483647, %v1034_v13 }
 0x185   : > { %1877 = vmatmul.msk.f32.gmra.mxu2 %vm863_vm4, %v1159_v17  ;;  %v1163_v18 = vsub.f32 1.0, %v1162_v16  ;;  %vm1181_vm13 = vweird.f32 %v1034_v13 }
 0x186   : > { %v962_v19 = vpop.f32.mrf.mxu1  ;;  %v1188_v41 = vor.u32 1.1754944e-38, %v1187_v34  ;;  %vm1186_vm15 = vcmp.eq.f32.partialorder %v1185_v36, 8.507059e+37 }
 0x187   : > { %v963_v21 = vadd.f32 %v2394_v7, %v962_v19  ;;  %v1164_v22 = vmul.f32 %v2036_v11, %v1163_v18 }
 0x189   : > { %v2038_v24 = vpop.eup %2037  ;;  %v1865_v25 = vmul.f32 -1.442695, %v963_v21  ;;  %v1165_v26 = vadd.f32 %v2036_v11, %v1164_v22 }
 0x18a   : > { %v2040_v27 = vpop.eup %2039  ;;  %v1035_v28 = vadd.f32 1.0, %v2038_v24 }
 0x18b   : > { %2041 = vpow2.f32 %v1865_v25  ;;  %v1169_v30 = vsel %vm1168_vm10, %v2036_v11, %v1165_v26  ;;  %v1177_v31 = vmul.f32 %v2040_v27, %v1034_v13  ;;  %vm1182_vm12 = vweird.f32 %v2040_v27 }
 0x18c   : > { %2043 = vrcp.f32 %v1035_v28  ;;  %v1174_v32 = vsel %vm1171_vm11, %v1173_v29, %v1169_v30  ;;  %vm1183_vm14 = vmor %vm1181_vm13, %vm1182_vm12  ;;  %v1202_v48 = vand.u32 2147483648, %v1035_v28  ;;  %v1200_v51 = vand.u32 2147483647, %v1035_v28 }
 0x18d   : > { %1878 = vmatmul.msk.f32.gmra.mxu2 %vm863_vm4, %v1174_v32  ;;  %v1178_v33 = vsub.f32 1.0, %v1177_v31  ;;  %vm1196_vm1 = vweird.f32 %v1035_v28 }
 0x18e   : > { %v1203_v54 = vor.u32 1.1754944e-38, %v1202_v48  ;;  %vm1201_vm3 = vcmp.eq.f32.partialorder %v1200_v51, 8.507059e+37 }
 0x18f   : > { %v1179_v35 = vmul.f32 %v2040_v27, %v1178_v33 }
 0x191   : > { %v2042_v37 = vpop.eup %2041  ;;  %v1180_v38 = vadd.f32 %v2040_v27, %v1179_v35 }
 0x192   : > { %v2044_v39 = vpop.eup %2043  ;;  %v1036_v40 = vadd.f32 1.0, %v2042_v37 }
 0x193   : > { %v1184_v42 = vsel %vm1183_vm14, %v2040_v27, %v1180_v38  ;;  %v1192_v43 = vmul.f32 %v2044_v39, %v1035_v28  ;;  %vm1197_vm0 = vweird.f32 %v2044_v39 }
 0x194   : > { %2045 = vrcp.f32 %v1036_v40  ;;  %v965_v44 = vpop.f32.mrf.mxu3  ;;  %v1189_v45 = vsel %vm1186_vm15, %v1188_v41, %v1184_v42  ;;  %vm1198_vm2 = vmor %vm1196_vm1, %vm1197_vm0  ;;  %v1217_v61 = vand.u32 2147483648, %v1036_v40  ;;  %v1215_v1 = vand.u32 2147483647, %v1036_v40 }
 0x195   : > { %v966_v46 = vadd.f32 %v2394_v7, %v965_v44  ;;  %1879 = vmatmul.msk.f32.gmra.mxu2 %vm863_vm4, %v1189_v45  ;;  %v1193_v47 = vsub.f32 1.0, %v1192_v43  ;;  %vm1211_vm6 = vweird.f32 %v1036_v40 }
 0x196   : > { %v1218_v5 = vor.u32 1.1754944e-38, %v1217_v61  ;;  %vm1216_vm8 = vcmp.eq.f32.partialorder %v1215_v1, 8.507059e+37 }
 0x197   : > { %v1866_v49 = vmul.f32 -1.442695, %v966_v46  ;;  %v1194_v50 = vmul.f32 %v2044_v39, %v1193_v47 }
 0x199   : > { %2047 = vpow2.f32 %v1866_v49  ;;  %v1195_v52 = vadd.f32 %v2044_v39, %v1194_v50 }
 0x19a   : > { %v2046_v53 = vpop.eup %2045 }
 0x19b   : > { %v1199_v55 = vsel %vm1198_vm2, %v2044_v39, %v1195_v52  ;;  %v1207_v56 = vmul.f32 %v2046_v53, %v1036_v40  ;;  %vm1212_vm5 = vweird.f32 %v2046_v53 }
 0x19c   : > { %v968_v57 = vpop.f32.mrf.mxu3  ;;  %v1204_v58 = vsel %vm1201_vm3, %v1203_v54, %v1199_v55  ;;  %vm1213_vm7 = vmor %vm1211_vm6, %vm1212_vm5 }
 0x19d   : > { %v969_v59 = vadd.f32 %v2394_v7, %v968_v57  ;;  %1880 = vmatmul.msk.f32.gmra.mxu2 %vm863_vm4, %v1204_v58  ;;  %v1208_v60 = vsub.f32 1.0, %v1207_v56 }
 0x19f   : > { %v2048_v62 = vpop.eup %2047  ;;  %v1867_v63 = vmul.f32 -1.442695, %v969_v59  ;;  %v1209_v0 = vmul.f32 %v2046_v53, %v1208_v60  ;;  %v2434_v59 = vld [vmem:[%s2501_s8] ss:$0 sm:$0xff] }
 0x1a0   : > { %v1037_v2 = vadd.f32 1.0, %v2048_v62 }
 0x1a1   : > { %2049 = vpow2.f32 %v1867_v63  ;;  %v1210_v3 = vadd.f32 %v2046_v53, %v1209_v0 }
 0x1a2   : > { %2051 = vrcp.f32 %v1037_v2  ;;  %v1232_v17 = vand.u32 2147483648, %v1037_v2  ;;  %v1230_v20 = vand.u32 2147483647, %v1037_v2  ;;  %vm1226_vm10 = vweird.f32 %v1037_v2 }
 0x1a3   : > { %v1214_v12 = vsel %vm1213_vm7, %v2046_v53, %v1210_v3 }
 0x1a4   : > { %v971_v6 = vpop.f32.mrf.mxu3  ;;  %v1219_v4 = vsel %vm1216_vm8, %v1218_v5, %v1214_v12  ;;  %v1233_v26 = vor.u32 1.1754944e-38, %v1232_v17  ;;  %vm1231_vm12 = vcmp.eq.f32.partialorder %v1230_v20, 8.507059e+37 }
 0x1a5   : > { %v972_v8 = vadd.f32 %v2394_v7, %v971_v6  ;;  %1881 = vmatmul.msk.f32.gmra.mxu2 %vm863_vm4, %v1219_v4 }
 0x1a7   : > { %v2050_v9 = vpop.eup %2049  ;;  %v1868_v10 = vmul.f32 -1.442695, %v972_v8 }
 0x1a8   : > { %v2052_v11 = vpop.eup %2051  ;;  %v1038_v13 = vadd.f32 1.0, %v2050_v9 }
 0x1a9   : > { %v1222_v14 = vmul.f32 %v2052_v11, %v1037_v2  ;;  %2053 = vpow2.f32 %v1868_v10  ;;  %vm1227_vm9 = vweird.f32 %v2052_v11 }
 0x1aa   : > { %2055 = vrcp.f32 %v1038_v13  ;;  %vm1228_vm11 = vmor %vm1226_vm10, %vm1227_vm9  ;;  %v1247_v30 = vand.u32 2147483648, %v1038_v13  ;;  %v1245_v32 = vand.u32 2147483647, %v1038_v13  ;;  %vm1241_vm14 = vweird.f32 %v1038_v13 }
 0x1ab   : > { %v1223_v15 = vsub.f32 1.0, %v1222_v14 }
 0x1ac   : > { %v974_v16 = vpop.f32.mrf.mxu3  ;;  %v1248_v37 = vor.u32 1.1754944e-38, %v1247_v30  ;;  %vm1246_vm0 = vcmp.eq.f32.partialorder %v1245_v32, 8.507059e+37 }
 0x1ad   : > { %v975_v18 = vadd.f32 %v2394_v7, %v974_v16  ;;  %v1224_v19 = vmul.f32 %v2052_v11, %v1223_v15 }
 0x1af   : > { %v2054_v21 = vpop.eup %2053  ;;  %v1869_v22 = vmul.f32 -1.442695, %v975_v18  ;;  %v1225_v23 = vadd.f32 %v2052_v11, %v1224_v19 }
 0x1b0   : > { %v2056_v24 = vpop.eup %2055  ;;  %v1039_v25 = vadd.f32 1.0, %v2054_v21 }
 0x1b1   : > { %2057 = vpow2.f32 %v1869_v22  ;;  %v1229_v27 = vsel %vm1228_vm11, %v2052_v11, %v1225_v23  ;;  %v1237_v28 = vmul.f32 %v2056_v24, %v1038_v13  ;;  %vm1242_vm13 = vweird.f32 %v2056_v24 }
 0x1b2   : > { %2059 = vrcp.f32 %v1039_v25  ;;  %v1234_v29 = vsel %vm1231_vm12, %v1233_v26, %v1229_v27  ;;  %vm1243_vm15 = vmor %vm1241_vm14, %vm1242_vm13  ;;  %v1262_v42 = vand.u32 2147483648, %v1039_v25  ;;  %v1260_v44 = vand.u32 2147483647, %v1039_v25 }
 0x1b3   : > { %1882 = vmatmul.msk.f32.vlgmr.msra.gmra.mxu3 %vm863_vm4, %v1234_v29  ;;  %v1238_v7 = vsub.f32 1.0, %v1237_v28  ;;  %vm1256_vm2 = vweird.f32 %v1039_v25  ;;  %vm1710_vm12 = vcmask 15360  }
 0x1b4   : > { %v1263_v47 = vor.u32 1.1754944e-38, %v1262_v42  ;;  %vm1261_vm5 = vcmp.eq.f32.partialorder %v1260_v44, 8.507059e+37 }
 0x1b5   : > { %v1239_v31 = vmul.f32 %v2056_v24, %v1238_v7 }
 0x1b7   : > { %v2058_v33 = vpop.eup %2057  ;;  %v1240_v34 = vadd.f32 %v2056_v24, %v1239_v31 }
 0x1b8   : > { %v2060_v35 = vpop.eup %2059  ;;  %v1040_v36 = vadd.f32 1.0, %v2058_v33 }
 0x1b9   : > { %v1244_v38 = vsel %vm1243_vm15, %v2056_v24, %v1240_v34  ;;  %v1252_v39 = vmul.f32 %v2060_v35, %v1039_v25  ;;  %vm1257_vm1 = vweird.f32 %v2060_v35 }
 0x1ba   : > { %2061 = vrcp.f32 %v1040_v36  ;;  %v1249_v40 = vsel %vm1246_vm0, %v1248_v37, %v1244_v38  ;;  %vm1258_vm3 = vmor %vm1256_vm2, %vm1257_vm1  ;;  %v1277_v52 = vand.u32 2147483648, %v1040_v36  ;;  %v1275_v54 = vand.u32 2147483647, %v1040_v36 }
 0x1bb   : > { %1883 = vmatmul.msk.f32.gmra.mxu3 %vm863_vm4, %v1249_v40  ;;  %v1253_v41 = vsub.f32 1.0, %v1252_v39  ;;  %vm1271_vm7 = vweird.f32 %v1040_v36 }
 0x1bc   : > { %v1278_v56 = vor.u32 1.1754944e-38, %v1277_v52  ;;  %vm1276_vm9 = vcmp.eq.f32.partialorder %v1275_v54, 8.507059e+37 }
 0x1bd   : > { %v1254_v43 = vmul.f32 %v2060_v35, %v1253_v41 }
 0x1bf   : > { %v1255_v45 = vadd.f32 %v2060_v35, %v1254_v43 }
 0x1c0   : > { %v2062_v46 = vpop.eup %2061 }
 0x1c1   : > { %v1259_v48 = vsel %vm1258_vm3, %v2060_v35, %v1255_v45  ;;  %v1267_v49 = vmul.f32 %v2062_v46, %v1040_v36  ;;  %vm1272_vm6 = vweird.f32 %v2062_v46 }
 0x1c2   : > { %v1264_v50 = vsel %vm1261_vm5, %v1263_v47, %v1259_v48  ;;  %vm1273_vm8 = vmor %vm1271_vm7, %vm1272_vm6 }
 0x1c3   : > { %1884 = vmatmul.msk.f32.gmra.mxu3 %vm863_vm4, %v1264_v50  ;;  %v1268_v51 = vsub.f32 1.0, %v1267_v49 }
 0x1c5   : > { %v1269_v53 = vmul.f32 %v2062_v46, %v1268_v51 }
 0x1c7   : > { %v1270_v55 = vadd.f32 %v2062_v46, %v1269_v53 }
 0x1c9   : > { %v1274_v57 = vsel %vm1273_vm8, %v2062_v46, %v1270_v55 }
 0x1ca   : > { %v1279_v58 = vsel %vm1276_vm9, %v1278_v56, %v1274_v57 }
 0x1cb   : > { %1885 = vmatmul.msk.f32.gmra.mxu3 %vm863_vm4, %v1279_v58 }
 0x1d0   : > { %v1358_v60 = vpop.f32.mrf.mxu2 }
 0x1d1   : > { %v1359_v61 = vadd.f32 %v2434_v59, %v1358_v60 }
 0x1d3   : > { %v1886_v62 = vmul.f32 -1.442695, %v1359_v61 }
 0x1d5   : > { %2063 = vpow2.f32 %v1886_v62 }
 0x1d8   : > { %v1361_v63 = vpop.f32.mrf.mxu2 }
 0x1d9   : > { %v1362_v0 = vadd.f32 %v2434_v59, %v1361_v63 }
 0x1db   : > { %v2064_v1 = vpop.eup %2063  ;;  %v1887_v2 = vmul.f32 -1.442695, %v1362_v0 }
 0x1dc   : > { %v1454_v3 = vadd.f32 1.0, %v2064_v1 }
 0x1dd   : > { %2065 = vpow2.f32 %v1887_v2 }
 0x1de   : > { %2067 = vrcp.f32 %v1454_v3  ;;  %v1481_v13 = vand.u32 2147483648, %v1454_v3  ;;  %v1479_v16 = vand.u32 2147483647, %v1454_v3  ;;  %vm1475_vm10 = vweird.f32 %v1454_v3 }
 0x1e0   : > { %v1364_v5 = vpop.f32.mrf.mxu2  ;;  %v1482_v22 = vor.u32 1.1754944e-38, %v1481_v13  ;;  %vm1480_vm13 = vcmp.eq.f32.partialorder %v1479_v16, 8.507059e+37 }
 0x1e1   : > { %v1365_v12 = vadd.f32 %v2434_v59, %v1364_v5 }
 0x1e3   : > { %v2066_v6 = vpop.eup %2065  ;;  %v1888_v4 = vmul.f32 -1.442695, %v1365_v12 }
 0x1e4   : > { %v2068_v8 = vpop.eup %2067  ;;  %v1455_v9 = vadd.f32 1.0, %v2066_v6 }
 0x1e5   : > { %v1471_v10 = vmul.f32 %v2068_v8, %v1454_v3  ;;  %2069 = vpow2.f32 %v1888_v4  ;;  %vm1476_vm4 = vweird.f32 %v2068_v8 }
 0x1e6   : > { %2071 = vrcp.f32 %v1455_v9  ;;  %vm1477_vm11 = vmor %vm1475_vm10, %vm1476_vm4  ;;  %v1496_v28 = vand.u32 2147483648, %v1455_v9  ;;  %v1494_v30 = vand.u32 2147483647, %v1455_v9  ;;  %vm1490_vm15 = vweird.f32 %v1455_v9 }
 0x1e7   : > { %v1472_v11 = vsub.f32 1.0, %v1471_v10 }
 0x1e8   : > { %v1367_v14 = vpop.f32.mrf.mxu2  ;;  %v1497_v36 = vor.u32 1.1754944e-38, %v1496_v28  ;;  %vm1495_vm1 = vcmp.eq.f32.partialorder %v1494_v30, 8.507059e+37 }
 0x1e9   : > { %v1473_v15 = vmul.f32 %v2068_v8, %v1472_v11  ;;  %v1368_v17 = vadd.f32 %v2434_v59, %v1367_v14 }
 0x1eb   : > { %v2070_v18 = vpop.eup %2069  ;;  %v1474_v19 = vadd.f32 %v2068_v8, %v1473_v15  ;;  %v1889_v20 = vmul.f32 -1.442695, %v1368_v17 }
 0x1ec   : > { %v2072_v21 = vpop.eup %2071  ;;  %v1456_v23 = vadd.f32 1.0, %v2070_v18 }
 0x1ed   : > { %v1478_v24 = vsel %vm1477_vm11, %v2068_v8, %v1474_v19  ;;  %v1486_v25 = vmul.f32 %v2072_v21, %v1455_v9  ;;  %2073 = vpow2.f32 %v1889_v20  ;;  %vm1491_vm14 = vweird.f32 %v2072_v21 }
 0x1ee   : > { %v1483_v26 = vsel %vm1480_vm13, %v1482_v22, %v1478_v24  ;;  %2075 = vrcp.f32 %v1456_v23  ;;  %vm1492_vm0 = vmor %vm1490_vm15, %vm1491_vm14  ;;  %v1511_v42 = vand.u32 2147483648, %v1456_v23  ;;  %v1509_v45 = vand.u32 2147483647, %v1456_v23 }
 0x1ef   : > { %1711 = vst.msk [vmem:[%s2444_s29] sm:$0xff] %vm1710_vm12, %v1483_v26  ;;  %v1487_v27 = vsub.f32 1.0, %v1486_v25  ;;  %vm1505_vm3 = vweird.f32 %v1456_v23 }
 0x1f0   : > { %v1370_v29 = vpop.f32.mrf.mxu2  ;;  %v1512_v51 = vor.u32 1.1754944e-38, %v1511_v42  ;;  %vm1510_vm6 = vcmp.eq.f32.partialorder %v1509_v45, 8.507059e+37 }
 0x1f1   : > { %v1488_v7 = vmul.f32 %v2072_v21, %v1487_v27  ;;  %v1371_v31 = vadd.f32 %v2434_v59, %v1370_v29 }
 0x1f3   : > { %v2074_v32 = vpop.eup %2073  ;;  %v1489_v33 = vadd.f32 %v2072_v21, %v1488_v7  ;;  %v1890_v34 = vmul.f32 -1.442695, %v1371_v31 }
 0x1f4   : > { %v2076_v35 = vpop.eup %2075  ;;  %v1457_v37 = vadd.f32 1.0, %v2074_v32 }
 0x1f5   : > { %v1493_v38 = vsel %vm1492_vm0, %v2072_v21, %v1489_v33  ;;  %v1501_v39 = vmul.f32 %v2076_v35, %v1456_v23  ;;  %2077 = vpow2.f32 %v1890_v34  ;;  %vm1506_vm2 = vweird.f32 %v2076_v35 }
 0x1f6   : > { %v1498_v40 = vsel %vm1495_vm1, %v1497_v36, %v1493_v38  ;;  %2079 = vrcp.f32 %v1457_v37  ;;  %vm1507_vm5 = vmor %vm1505_vm3, %vm1506_vm2  ;;  %v1526_v57 = vand.u32 2147483648, %v1457_v37  ;;  %v1524_v61 = vand.u32 2147483647, %v1457_v37 }
 0x1f7   : > { %1712 = vst.msk [vmem:[%s2444_s29 + $0x8] sm:$0xff] %vm1710_vm12, %v1498_v40  ;;  %v1502_v41 = vsub.f32 1.0, %v1501_v39  ;;  %vm1520_vm8 = vweird.f32 %v1457_v37 }
 0x1f8   : > { %v1373_v43 = vpop.f32.mrf.mxu2  ;;  %v1527_v3 = vor.u32 1.1754944e-38, %v1526_v57  ;;  %vm1525_vm4 = vcmp.eq.f32.partialorder %v1524_v61, 8.507059e+37 }
 0x1f9   : > { %v1503_v44 = vmul.f32 %v2076_v35, %v1502_v41  ;;  %v1374_v46 = vadd.f32 %v2434_v59, %v1373_v43 }
 0x1fb   : > { %v2078_v47 = vpop.eup %2077  ;;  %v1504_v48 = vadd.f32 %v2076_v35, %v1503_v44  ;;  %v1891_v49 = vmul.f32 -1.442695, %v1374_v46 }
 0x1fc   : > { %v2080_v50 = vpop.eup %2079  ;;  %v1458_v52 = vadd.f32 1.0, %v2078_v47 }
 0x1fd   : > { %v1508_v53 = vsel %vm1507_vm5, %v2076_v35, %v1504_v48  ;;  %v1516_v54 = vmul.f32 %v2080_v50, %v1457_v37  ;;  %2081 = vpow2.f32 %v1891_v49  ;;  %vm1521_vm7 = vweird.f32 %v2080_v50 }
 0x1fe   : > { %v1513_v55 = vsel %vm1510_vm6, %v1512_v51, %v1508_v53  ;;  %2083 = vrcp.f32 %v1458_v52  ;;  %vm1522_vm9 = vmor %vm1520_vm8, %vm1521_vm7  ;;  %v1541_v9 = vand.u32 2147483648, %v1458_v52  ;;  %v1539_v13 = vand.u32 2147483647, %v1458_v52 }
 0x1ff   : > { %1713 = vst.msk [vmem:[%s2444_s29 + $0x10] sm:$0xff] %vm1710_vm12, %v1513_v55  ;;  %v1517_v56 = vsub.f32 1.0, %v1516_v54  ;;  %vm1535_vm11 = vweird.f32 %v1458_v52 }
 0x200   : > { %v1376_v58 = vpop.f32.mrf.mxu2  ;;  %v1542_v19 = vor.u32 1.1754944e-38, %v1541_v9  ;;  %vm1540_vm14 = vcmp.eq.f32.partialorder %v1539_v13, 8.507059e+37 }
 0x201   : > { %v1518_v60 = vmul.f32 %v2080_v50, %v1517_v56  ;;  %v1377_v62 = vadd.f32 %v2434_v59, %v1376_v58 }
 0x203   : > { %v2082_v63 = vpop.eup %2081  ;;  %v1519_v0 = vadd.f32 %v2080_v50, %v1518_v60  ;;  %v1892_v1 = vmul.f32 -1.442695, %v1377_v62 }
 0x204   : > { %v2084_v2 = vpop.eup %2083  ;;  %v1459_v5 = vadd.f32 1.0, %v2082_v63 }
 0x205   : > { %v1523_v12 = vsel %vm1522_vm9, %v2080_v50, %v1519_v0  ;;  %v1531_v6 = vmul.f32 %v2084_v2, %v1458_v52  ;;  %2085 = vpow2.f32 %v1892_v1  ;;  %vm1536_vm10 = vweird.f32 %v2084_v2 }
 0x206   : > { %v1528_v4 = vsel %vm1525_vm4, %v1527_v3, %v1523_v12  ;;  %2087 = vrcp.f32 %v1459_v5  ;;  %vm1537_vm13 = vmor %vm1535_vm11, %vm1536_vm10  ;;  %v1556_v25 = vand.u32 2147483648, %v1459_v5  ;;  %v1554_v28 = vand.u32 2147483647, %v1459_v5 }
 0x207   : > { %1714 = vst.msk [vmem:[%s2444_s29 + $0x18] sm:$0xff] %vm1710_vm12, %v1528_v4  ;;  %v1532_v8 = vsub.f32 1.0, %v1531_v6  ;;  %vm1550_vm0 = vweird.f32 %v1459_v5 }
 0x208   : > { %v1379_v10 = vpop.f32.mrf.mxu2  ;;  %v1557_v33 = vor.u32 1.1754944e-38, %v1556_v25  ;;  %vm1555_vm2 = vcmp.eq.f32.partialorder %v1554_v28, 8.507059e+37 }
 0x209   : > { %v1533_v11 = vmul.f32 %v2084_v2, %v1532_v8  ;;  %v1380_v14 = vadd.f32 %v2434_v59, %v1379_v10 }
 0x20b   : > { %v2086_v15 = vpop.eup %2085  ;;  %v1534_v16 = vadd.f32 %v2084_v2, %v1533_v11  ;;  %v1893_v17 = vmul.f32 -1.442695, %v1380_v14 }
 0x20c   : > { %v2088_v18 = vpop.eup %2087  ;;  %v1460_v20 = vadd.f32 1.0, %v2086_v15 }
 0x20d   : > { %v1538_v21 = vsel %vm1537_vm13, %v2084_v2, %v1534_v16  ;;  %v1546_v22 = vmul.f32 %v2088_v18, %v1459_v5  ;;  %2089 = vpow2.f32 %v1893_v17  ;;  %vm1551_vm15 = vweird.f32 %v2088_v18 }
 0x20e   : > { %v1543_v23 = vsel %vm1540_vm14, %v1542_v19, %v1538_v21  ;;  %2091 = vrcp.f32 %v1460_v20  ;;  %vm1552_vm1 = vmor %vm1550_vm0, %vm1551_vm15  ;;  %v1571_v39 = vand.u32 2147483648, %v1460_v20  ;;  %v1569_v42 = vand.u32 2147483647, %v1460_v20 }
 0x20f   : > { %1715 = vst.msk [vmem:[%s2444_s29 + $0x20] sm:$0xff] %vm1710_vm12, %v1543_v23  ;;  %v1547_v24 = vsub.f32 1.0, %v1546_v22  ;;  %vm1565_vm5 = vweird.f32 %v1460_v20 }
 0x210   : > { %v1382_v26 = vpop.f32.mrf.mxu2  ;;  %v1572_v48 = vor.u32 1.1754944e-38, %v1571_v39  ;;  %vm1570_vm7 = vcmp.eq.f32.partialorder %v1569_v42, 8.507059e+37 }
 0x211   : > { %v1548_v27 = vmul.f32 %v2088_v18, %v1547_v24  ;;  %v1383_v29 = vadd.f32 %v2434_v59, %v1382_v26 }
 0x213   : > { %v2090_v7 = vpop.eup %2089  ;;  %v1549_v30 = vadd.f32 %v2088_v18, %v1548_v27  ;;  %v1894_v31 = vmul.f32 -1.442695, %v1383_v29 }
 0x214   : > { %v2092_v32 = vpop.eup %2091  ;;  %v1461_v34 = vadd.f32 1.0, %v2090_v7 }
 0x215   : > { %v1553_v35 = vsel %vm1552_vm1, %v2088_v18, %v1549_v30  ;;  %v1561_v36 = vmul.f32 %v2092_v32, %v1460_v20  ;;  %2093 = vpow2.f32 %v1894_v31  ;;  %vm1566_vm3 = vweird.f32 %v2092_v32 }
 0x216   : > { %v1558_v37 = vsel %vm1555_vm2, %v1557_v33, %v1553_v35  ;;  %2095 = vrcp.f32 %v1461_v34  ;;  %vm1567_vm6 = vmor %vm1565_vm5, %vm1566_vm3  ;;  %v1586_v54 = vand.u32 2147483648, %v1461_v34  ;;  %v1584_v57 = vand.u32 2147483647, %v1461_v34 }
 0x217   : > { %1716 = vst.msk [vmem:[%s2444_s29 + $0x28] sm:$0xff] %vm1710_vm12, %v1558_v37  ;;  %v1562_v38 = vsub.f32 1.0, %v1561_v36  ;;  %vm1580_vm9 = vweird.f32 %v1461_v34 }
 0x218   : > { %v1385_v40 = vpop.f32.mrf.mxu2  ;;  %v1587_v0 = vor.u32 1.1754944e-38, %v1586_v54  ;;  %vm1585_vm10 = vcmp.eq.f32.partialorder %v1584_v57, 8.507059e+37 }
 0x219   : > { %v1563_v41 = vmul.f32 %v2092_v32, %v1562_v38  ;;  %v1386_v43 = vadd.f32 %v2434_v59, %v1385_v40 }
 0x21b   : > { %v2094_v44 = vpop.eup %2093  ;;  %v1564_v45 = vadd.f32 %v2092_v32, %v1563_v41  ;;  %v1895_v46 = vmul.f32 -1.442695, %v1386_v43 }
 0x21c   : > { %v2096_v47 = vpop.eup %2095  ;;  %v1462_v49 = vadd.f32 1.0, %v2094_v44 }
 0x21d   : > { %v1568_v50 = vsel %vm1567_vm6, %v2092_v32, %v1564_v45  ;;  %v1576_v51 = vmul.f32 %v2096_v47, %v1461_v34  ;;  %2097 = vpow2.f32 %v1895_v46  ;;  %vm1581_vm8 = vweird.f32 %v2096_v47 }
 0x21e   : > { %v1573_v52 = vsel %vm1570_vm7, %v1572_v48, %v1568_v50  ;;  %2099 = vrcp.f32 %v1462_v49  ;;  %vm1582_vm4 = vmor %vm1580_vm9, %vm1581_vm8  ;;  %v1601_v6 = vand.u32 2147483648, %v1462_v49  ;;  %v1599_v9 = vand.u32 2147483647, %v1462_v49 }
 0x21f   : > { %1717 = vst.msk [vmem:[%s2444_s29 + $0x30] sm:$0xff] %vm1710_vm12, %v1573_v52  ;;  %v1577_v53 = vsub.f32 1.0, %v1576_v51  ;;  %vm1595_vm13 = vweird.f32 %v1462_v49 }
 0x220   : > { %v1388_v55 = vpop.f32.mrf.mxu2  ;;  %v1602_v16 = vor.u32 1.1754944e-38, %v1601_v6  ;;  %vm1600_vm15 = vcmp.eq.f32.partialorder %v1599_v9, 8.507059e+37 }
 0x221   : > { %v1578_v56 = vmul.f32 %v2096_v47, %v1577_v53  ;;  %v1389_v58 = vadd.f32 %v2434_v59, %v1388_v55 }
 0x223   : > { %v2098_v60 = vpop.eup %2097  ;;  %v1579_v61 = vadd.f32 %v2096_v47, %v1578_v56  ;;  %v1896_v62 = vmul.f32 -1.442695, %v1389_v58 }
 0x224   : > { %v2100_v63 = vpop.eup %2099  ;;  %v1463_v1 = vadd.f32 1.0, %v2098_v60 }
 0x225   : > { %v1583_v2 = vsel %vm1582_vm4, %v2096_v47, %v1579_v61  ;;  %v1591_v3 = vmul.f32 %v2100_v63, %v1462_v49  ;;  %2101 = vpow2.f32 %v1896_v62  ;;  %vm1596_vm11 = vweird.f32 %v2100_v63 }
 0x226   : > { %v1588_v5 = vsel %vm1585_vm10, %v1587_v0, %v1583_v2  ;;  %2103 = vrcp.f32 %v1463_v1  ;;  %vm1597_vm14 = vmor %vm1595_vm13, %vm1596_vm11  ;;  %v1616_v22 = vand.u32 2147483648, %v1463_v1  ;;  %v1614_v24 = vand.u32 2147483647, %v1463_v1 }
 0x227   : > { %1718 = vst.msk [vmem:[%s2444_s29 + $0x38] sm:$0xff] %vm1710_vm12, %v1588_v5  ;;  %v1592_v12 = vsub.f32 1.0, %v1591_v3  ;;  %vm1610_vm1 = vweird.f32 %v1463_v1 }
 0x228   : > { %v1391_v4 = vpop.f32.mrf.mxu2  ;;  %v1617_v28 = vor.u32 1.1754944e-38, %v1616_v22  ;;  %vm1615_vm3 = vcmp.eq.f32.partialorder %v1614_v24, 8.507059e+37 }
 0x229   : > { %v1593_v8 = vmul.f32 %v2100_v63, %v1592_v12  ;;  %v1392_v10 = vadd.f32 %v2434_v59, %v1391_v4 }
 0x22b   : > { %v2102_v11 = vpop.eup %2101  ;;  %v1594_v13 = vadd.f32 %v2100_v63, %v1593_v8  ;;  %v1897_v14 = vmul.f32 -1.442695, %v1392_v10 }
 0x22c   : > { %v2104_v15 = vpop.eup %2103  ;;  %v1464_v17 = vadd.f32 1.0, %v2102_v11 }
 0x22d   : > { %v1598_v18 = vsel %vm1597_vm14, %v2100_v63, %v1594_v13  ;;  %v1606_v19 = vmul.f32 %v2104_v15, %v1463_v1  ;;  %2105 = vpow2.f32 %v1897_v14  ;;  %vm1611_vm0 = vweird.f32 %v2104_v15 }
 0x22e   : > { %v1603_v20 = vsel %vm1600_vm15, %v1602_v16, %v1598_v18  ;;  %2107 = vrcp.f32 %v1464_v17  ;;  %vm1612_vm2 = vmor %vm1610_vm1, %vm1611_vm0  ;;  %v1631_v35 = vand.u32 2147483648, %v1464_v17  ;;  %v1629_v37 = vand.u32 2147483647, %v1464_v17 }
 0x22f   : > { %1719 = vst.msk [vmem:[%s2444_s29 + $0x40] sm:$0xff] %vm1710_vm12, %v1603_v20  ;;  %v1607_v21 = vsub.f32 1.0, %v1606_v19  ;;  %vm1625_vm6 = vweird.f32 %v1464_v17 }
 0x230   : > { %v1632_v41 = vor.u32 1.1754944e-38, %v1631_v35  ;;  %vm1630_vm8 = vcmp.eq.f32.partialorder %v1629_v37, 8.507059e+37 }
 0x231   : > { %v1608_v23 = vmul.f32 %v2104_v15, %v1607_v21 }
 0x233   : > { %v2106_v25 = vpop.eup %2105  ;;  %v1609_v26 = vadd.f32 %v2104_v15, %v1608_v23 }
 0x234   : > { %v2108_v27 = vpop.eup %2107  ;;  %v1465_v29 = vadd.f32 1.0, %v2106_v25 }
 0x235   : > { %v1613_v7 = vsel %vm1612_vm2, %v2104_v15, %v1609_v26  ;;  %v1621_v30 = vmul.f32 %v2108_v27, %v1464_v17  ;;  %vm1626_vm5 = vweird.f32 %v2108_v27 }
 0x236   : > { %v1618_v31 = vsel %vm1615_vm3, %v1617_v28, %v1613_v7  ;;  %2109 = vrcp.f32 %v1465_v29  ;;  %v1394_v32 = vpop.f32.mrf.mxu3  ;;  %vm1627_vm7 = vmor %vm1625_vm6, %vm1626_vm5  ;;  %v1646_v48 = vand.u32 2147483648, %v1465_v29  ;;  %v1644_v51 = vand.u32 2147483647, %v1465_v29 }
 0x237   : > { %1720 = vst.msk [vmem:[%s2444_s29 + $0x48] sm:$0xff] %vm1710_vm12, %v1618_v31  ;;  %v1622_v33 = vsub.f32 1.0, %v1621_v30  ;;  %v1395_v34 = vadd.f32 %v2434_v59, %v1394_v32  ;;  %vm1640_vm4 = vweird.f32 %v1465_v29 }
 0x238   : > { %v1647_v55 = vor.u32 1.1754944e-38, %v1646_v48  ;;  %vm1645_vm11 = vcmp.eq.f32.partialorder %v1644_v51, 8.507059e+37 }
 0x239   : > { %v1623_v36 = vmul.f32 %v2108_v27, %v1622_v33  ;;  %v1898_v38 = vmul.f32 -1.442695, %v1395_v34 }
 0x23b   : > { %v1624_v39 = vadd.f32 %v2108_v27, %v1623_v36  ;;  %2111 = vpow2.f32 %v1898_v38 }
 0x23c   : > { %v2110_v40 = vpop.eup %2109 }
 0x23d   : > { %v1628_v42 = vsel %vm1627_vm7, %v2108_v27, %v1624_v39  ;;  %v1636_v43 = vmul.f32 %v2110_v40, %v1465_v29  ;;  %vm1641_vm9 = vweird.f32 %v2110_v40 }
 0x23e   : > { %v1633_v44 = vsel %vm1630_vm8, %v1632_v41, %v1628_v42  ;;  %v1397_v45 = vpop.f32.mrf.mxu3  ;;  %vm1642_vm10 = vmor %vm1640_vm4, %vm1641_vm9 }
 0x23f   : > { %1721 = vst.msk [vmem:[%s2444_s29 + $0x50] sm:$0xff] %vm1710_vm12, %v1633_v44  ;;  %v1637_v46 = vsub.f32 1.0, %v1636_v43  ;;  %v1398_v47 = vadd.f32 %v2434_v59, %v1397_v45 }
 0x241   : > { %v2112_v49 = vpop.eup %2111  ;;  %v1638_v50 = vmul.f32 %v2110_v40, %v1637_v46  ;;  %v1899_v52 = vmul.f32 -1.442695, %v1398_v47 }
 0x242   : > { %v1466_v53 = vadd.f32 1.0, %v2112_v49 }
 0x243   : > { %v1639_v54 = vadd.f32 %v2110_v40, %v1638_v50  ;;  %2113 = vpow2.f32 %v1899_v52 }
 0x244   : > { %2115 = vrcp.f32 %v1466_v53  ;;  %v1661_v3 = vand.u32 2147483648, %v1466_v53  ;;  %v1659_v6 = vand.u32 2147483647, %v1466_v53  ;;  %vm1655_vm14 = vweird.f32 %v1466_v53 }
 0x245   : > { %v1643_v56 = vsel %vm1642_vm10, %v2110_v40, %v1639_v54 }
 0x246   : > { %v1648_v57 = vsel %vm1645_vm11, %v1647_v55, %v1643_v56  ;;  %v1400_v58 = vpop.f32.mrf.mxu3  ;;  %v1662_v13 = vor.u32 1.1754944e-38, %v1661_v3  ;;  %vm1660_vm0 = vcmp.eq.f32.partialorder %v1659_v6, 8.507059e+37 }
 0x247   : > { %1722 = vst.msk [vmem:[%s2444_s29 + $0x58] sm:$0xff] %vm1710_vm12, %v1648_v57  ;;  %v1401_v60 = vadd.f32 %v2434_v59, %v1400_v58 }
 0x249   : > { %v2114_v61 = vpop.eup %2113  ;;  %v1900_v62 = vmul.f32 -1.442695, %v1401_v60 }
 0x24a   : > { %v2116_v63 = vpop.eup %2115  ;;  %v1467_v0 = vadd.f32 1.0, %v2114_v61 }
 0x24b   : > { %v1651_v1 = vmul.f32 %v2116_v63, %v1466_v53  ;;  %2117 = vpow2.f32 %v1900_v62  ;;  %vm1656_vm13 = vweird.f32 %v2116_v63 }
 0x24c   : > { %2119 = vrcp.f32 %v1467_v0  ;;  %vm1657_vm15 = vmor %vm1655_vm14, %vm1656_vm13  ;;  %v1676_v19 = vand.u32 2147483648, %v1467_v0  ;;  %v1674_v20 = vand.u32 2147483647, %v1467_v0  ;;  %vm1670_vm2 = vweird.f32 %v1467_v0 }
 0x24d   : > { %v1652_v2 = vsub.f32 1.0, %v1651_v1 }
 0x24e   : > { %v1403_v5 = vpop.f32.mrf.mxu3  ;;  %v1677_v24 = vor.u32 1.1754944e-38, %v1676_v19  ;;  %vm1675_vm5 = vcmp.eq.f32.partialorder %v1674_v20, 8.507059e+37 }
 0x24f   : > { %v1653_v12 = vmul.f32 %v2116_v63, %v1652_v2  ;;  %v1404_v4 = vadd.f32 %v2434_v59, %v1403_v5 }
 0x251   : > { %v2118_v8 = vpop.eup %2117  ;;  %v1654_v9 = vadd.f32 %v2116_v63, %v1653_v12  ;;  %v1901_v10 = vmul.f32 -1.442695, %v1404_v4 }
 0x252   : > { %v2120_v11 = vpop.eup %2119  ;;  %v1468_v14 = vadd.f32 1.0, %v2118_v8 }
 0x253   : > { %v1658_v15 = vsel %vm1657_vm15, %v2116_v63, %v1654_v9  ;;  %v1666_v16 = vmul.f32 %v2120_v11, %v1467_v0  ;;  %2121 = vpow2.f32 %v1901_v10  ;;  %vm1671_vm1 = vweird.f32 %v2120_v11 }
 0x254   : > { %v1663_v17 = vsel %vm1660_vm0, %v1662_v13, %v1658_v15  ;;  %2123 = vrcp.f32 %v1468_v14  ;;  %vm1672_vm3 = vmor %vm1670_vm2, %vm1671_vm1  ;;  %v1691_v7 = vand.u32 2147483648, %v1468_v14  ;;  %v1689_v31 = vand.u32 2147483647, %v1468_v14 }
 0x255   : > { %1723 = vst.msk [vmem:[%s2444_s29 + $0x60] sm:$0xff] %vm1710_vm12, %v1663_v17  ;;  %v1667_v18 = vsub.f32 1.0, %v1666_v16  ;;  %vm1685_vm7 = vweird.f32 %v1468_v14 }
 0x256   : > { %v1692_v34 = vor.u32 1.1754944e-38, %v1691_v7  ;;  %vm1690_vm9 = vcmp.eq.f32.partialorder %v1689_v31, 8.507059e+37 }
 0x257   : > { %v1668_v59 = vmul.f32 %v2120_v11, %v1667_v18 }
 0x259   : > { %v2122_v21 = vpop.eup %2121  ;;  %v1669_v22 = vadd.f32 %v2120_v11, %v1668_v59 }
 0x25a   : > { %v2124_v23 = vpop.eup %2123  ;;  %v1469_v25 = vadd.f32 1.0, %v2122_v21 }
 0x25b   : > { %v1673_v26 = vsel %vm1672_vm3, %v2120_v11, %v1669_v22  ;;  %v1681_v27 = vmul.f32 %v2124_v23, %v1468_v14  ;;  %vm1686_vm6 = vweird.f32 %v2124_v23 }
 0x25c   : > { %v1678_v28 = vsel %vm1675_vm5, %v1677_v24, %v1673_v26  ;;  %2125 = vrcp.f32 %v1469_v25  ;;  %vm1687_vm8 = vmor %vm1685_vm7, %vm1686_vm6  ;;  %v1706_v39 = vand.u32 2147483648, %v1469_v25  ;;  %v1704_v41 = vand.u32 2147483647, %v1469_v25 }
 0x25d   : > { %1724 = vst.msk [vmem:[%s2444_s29 + $0x68] sm:$0xff] %vm1710_vm12, %v1678_v28  ;;  %v1682_v29 = vsub.f32 1.0, %v1681_v27  ;;  %vm1700_vm10 = vweird.f32 %v1469_v25 }
 0x25e   : > { %v1707_v43 = vor.u32 1.1754944e-38, %v1706_v39  ;;  %vm1705_vm13 = vcmp.eq.f32.partialorder %v1704_v41, 8.507059e+37 }
 0x25f   : > { %v1683_v30 = vmul.f32 %v2124_v23, %v1682_v29 }
 0x261   : > { %v1684_v32 = vadd.f32 %v2124_v23, %v1683_v30 }
 0x262   : > { %v2126_v33 = vpop.eup %2125 }
 0x263   : > { %v1688_v35 = vsel %vm1687_vm8, %v2124_v23, %v1684_v32  ;;  %v1696_v36 = vmul.f32 %v2126_v33, %v1469_v25  ;;  %vm1701_vm4 = vweird.f32 %v2126_v33 }
 0x264   : > { %v1693_v37 = vsel %vm1690_vm9, %v1692_v34, %v1688_v35  ;;  %vm1702_vm11 = vmor %vm1700_vm10, %vm1701_vm4 }
 0x265   : > { %1725 = vst.msk [vmem:[%s2444_s29 + $0x70] sm:$0xff] %vm1710_vm12, %v1693_v37  ;;  %v1697_v38 = vsub.f32 1.0, %v1696_v36 }
 0x267   : > { %v1698_v40 = vmul.f32 %v2126_v33, %v1697_v38 }
 0x269   : > { %v1699_v42 = vadd.f32 %v2126_v33, %v1698_v40 }
 0x26b   : > { %v1703_v44 = vsel %vm1702_vm11, %v2126_v33, %v1699_v42 }
 0x26c   : > { %v1708_v45 = vsel %vm1705_vm13, %v1707_v43, %v1703_v44 }
 0x26d   : > { %1726 = vst.msk [vmem:[%s2444_s29 + $0x78] sm:$0xff] %vm1710_vm12, %v1708_v45 }
 0x26e PF: > { %s20_s11 = sadd.s32 1, %s2133_s11  }
 0x26f   : > { %p17_p4 = scmp.ge.s32.totalorder %s20_s11, 4  }
 0x271   :  { %19 = sbr.rel (!%p17_p4) target bundleno = 2 (0x2), region = 89 }

</bundles_post_ra>
